<compile_context>
chip_gen: v6e
topology: v6e:2x2x1
jax: 0.10.0
libtpu: 0.0.40
codegen_flags: <defaults>
</compile_context>

<pallas_src>
import functools

import jax
import jax.numpy as jnp
from jax.experimental import pallas as pl
from jax.experimental.pallas import tpu as pltpu


def _adm_kernel(x1_ref, x2_ref, l12_ref, diag_ref, col_ref,
                m_scr, l_scr, d_scr, *, s, m):
    q = pl.program_id(0)
    k = pl.program_id(1)
    nk = pl.num_programs(1)

    # ---- init per-row running LSE state at the first key tile -------------
    @pl.when(k == 0)
    def _():
        m_scr[...] = jnp.full(m_scr.shape, -jnp.inf, jnp.float32)
        l_scr[...] = jnp.zeros(l_scr.shape, jnp.float32)
        d_scr[...] = jnp.zeros(d_scr.shape, jnp.float32)

    # ---- scaled similarity tile on the MXU (x2 in natural (T, D) layout) --
    scores = jax.lax.dot_general(
        x1_ref[...], x2_ref[...],
        dimension_numbers=(((1,), (1,)), ((), ())),
        preferred_element_type=jnp.float32) * s               # (TQ, TK) = s*x12

    # ---- single exp pass, shifted by the tile max (numerical stability) ---
    t = jnp.max(jnp.max(scores, axis=1, keepdims=True),
                axis=0, keepdims=True)                         # (1, 1)
    e = jnp.exp(scores - t)                                    # (TQ, TK)

    row_part = jnp.sum(e, axis=1, keepdims=True)               # (TQ, 1)
    col_part = jnp.sum(e, axis=0, keepdims=True)               # (1, TK)

    # ---- online (flash-style) accumulation of row sums over key tiles -----
    m_old = m_scr[...]
    m_new = jnp.maximum(m_old, t)
    l_scr[...] = l_scr[...] * jnp.exp(m_old - m_new) + row_part * jnp.exp(t - m_new)
    m_scr[...] = m_new

    # ---- per-column log-sum-exp partial for this tile (feeds x21 term) ----
    # Broadcast to 8 sublanes so the output block is (8, TK)-aligned.
    col_ref[...] = jnp.broadcast_to(t + jnp.log(col_part), col_ref.shape)

    # ---- diagonal tile: grab S[i, i] (only num_q of num_q*num_k steps) ----
    @pl.when(q == k)
    def _():
        tq, tk = scores.shape
        rows = jax.lax.broadcasted_iota(jnp.int32, (tq, tk), 0)
        cols = jax.lax.broadcasted_iota(jnp.int32, (tq, tk), 1)
        d_scr[...] = jnp.sum(jnp.where(rows == cols, scores, 0.0),
                             axis=1, keepdims=True)            # (TQ, 1)

    # ---- finalize per-row L12 after the last key tile ----------------------
    @pl.when(k == nk - 1)
    def _():
        m_r = m_scr[...]                                       # (TQ, 1)
        l_r = l_scr[...]                                       # (TQ, 1) shifted row sum
        d = d_scr[...]                                         # (TQ, 1) = s*x12[i, i]
        num = d - s * m                                        # s*(diag - m)
        # denom = exp(num) + (rowsum - exp(d));  rowsum = exp(m_r) * l_r
        log_den = m_r + jnp.log(jnp.exp(num - m_r) + l_r - jnp.exp(d - m_r))
        l12 = num - log_den
        l12_ref[...] = jnp.broadcast_to(l12, l12_ref.shape)    # lane-dense store
        diag_ref[...] = jnp.broadcast_to(d, diag_ref.shape)


def _pick_block(n):
    for cand in (512, 256, 128):
        if n % cand == 0:
            return cand
    # TODO(synk): pad + mask ragged N instead of falling back to a single tile.
    return n


def adm_softmax_loss(x1, x2, s=1.0, m=0.4, block=None):
    """AM-Softmax loss matching the PyTorch AdMSoftmaxLoss.forward(x1, x2)."""
    N, D = x1.shape
    assert x2.shape == (N, D), "x1 and x2 must both be (N, in_features)"
    s = float(s)
    m = float(m)
    T = _pick_block(N) if block is None else block
    assert N % T == 0
    num_q = num_k = N // T

    kernel = functools.partial(_adm_kernel, s=s, m=m)
    out_l12, out_diag, out_col = pl.pallas_call(
        kernel,
        out_shape=(
            jax.ShapeDtypeStruct((N, 128), jnp.float32),       # per-row L12
            jax.ShapeDtypeStruct((N, 128), jnp.float32),       # per-row s*x12[i,i]
            jax.ShapeDtypeStruct((num_q * 8, N), jnp.float32),  # per-tile column LSE
        ),
        grid_spec=pltpu.PrefetchScalarGridSpec(
            num_scalar_prefetch=0,
            grid=(num_q, num_k),
            in_specs=[
                pl.BlockSpec((T, D), lambda q, k: (q, 0)),      # x1 row tile (resident over k)
                pl.BlockSpec((T, D), lambda q, k: (k, 0)),      # x2 key tile (streamed)
            ],
            out_specs=[
                pl.BlockSpec((T, 128), lambda q, k: (q, 0)),
                pl.BlockSpec((T, 128), lambda q, k: (q, 0)),
                pl.BlockSpec((8, T), lambda q, k: (q, k)),
            ],
            scratch_shapes=[
                pltpu.VMEM((T, 1), jnp.float32),                # running row max
                pltpu.VMEM((T, 1), jnp.float32),                # running shifted row sum
                pltpu.VMEM((T, 1), jnp.float32),                # diagonal S[i, i]
            ],
        ),
        compiler_params=pltpu.CompilerParams(
            dimension_semantics=("parallel", "arbitrary"),
            vmem_limit_bytes=48 * 1024 * 1024,
        ),
    )(x1, x2)

    # ---- tiny O(N) finalization in the wrapper (lane-dense kernel outputs) --
    l12 = out_l12[:, 0]                                        # (N,)
    diag_s = out_diag[:, 0]                                    # (N,)  s*x12[i, i]
    col_lse = out_col.reshape(num_q, 8, N)[:, 0, :]            # (num_q, N)

    num = diag_s - s * m
    shift = jnp.maximum(jnp.max(col_lse, axis=0), num)         # stable combine shift
    colsum = jnp.sum(jnp.exp(col_lse - shift[None, :]), axis=0)  # sum_i exp(S[i,j]-shift)
    log_den21 = shift + jnp.log(jnp.exp(num - shift) + colsum - jnp.exp(diag_s - shift))
    l21 = num - log_den21

    return -(jnp.mean(l12) + jnp.mean(l21))


def _reference_loss(x1, x2, s=1.0, m=0.4):
    # Pure-JAX reference mirroring the PyTorch module exactly.
    x1 = x1.astype(jnp.float32)
    x2 = x2.astype(jnp.float32)
    n = x1.shape[0]
    eye = jnp.eye(n, dtype=bool)

    def mean_loss(mat):
        diag = jnp.diagonal(mat)
        numerator = s * (diag - m)
        excl_sum = jnp.sum(jnp.where(eye, 0.0, jnp.exp(s * mat)), axis=1)
        denominator = jnp.exp(numerator) + excl_sum
        return jnp.mean(numerator - jnp.log(denominator))

    x12 = x1 @ x2.T
    x21 = x2 @ x1.T
    return -mean_loss(x12) - mean_loss(x21)


if __name__ == "__main__":
    key = jax.random.PRNGKey(0)
    k1, k2, k3, k4 = jax.random.split(key, 4)

    # Tiled path: grid (3, 3) of 128x128 score tiles.
    N, D = 384, 64
    x1 = jax.random.normal(k1, (N, D), dtype=jnp.float32)
    x2 = jax.random.normal(k2, (N, D), dtype=jnp.float32)
    loss = jax.block_until_ready(adm_softmax_loss(x1, x2, s=1.0, m=0.4))
    ref = _reference_loss(x1, x2, s=1.0, m=0.4)
    assert jnp.allclose(loss, ref, rtol=1e-4, atol=1e-4), (loss, ref)

    # Tiny single-tile path (same shapes as the original test).
    N2, D2 = 8, 32
    y1 = jax.random.normal(k3, (N2, D2), dtype=jnp.float32)
    y2 = jax.random.normal(k4, (N2, D2), dtype=jnp.float32)
    loss2 = jax.block_until_ready(adm_softmax_loss(y1, y2, s=1.0, m=0.4))
    ref2 = _reference_loss(y1, y2, s=1.0, m=0.4)
    assert jnp.allclose(loss2, ref2, rtol=1e-4, atol=1e-4), (loss2, ref2)

    print("KERNEL_OK")
</pallas_src>

<mosaic_0001>
module attributes {stable_mosaic.version = 11 : i64} {
  func.func @_adm_kernel(%arg0: i32, %arg1: i32, %arg2: memref<128x64xf32, #tpu.memory_space<vmem>>, %arg3: memref<128x64xf32, #tpu.memory_space<vmem>>, %arg4: memref<128x128xf32, #tpu.memory_space<vmem>>, %arg5: memref<128x128xf32, #tpu.memory_space<vmem>>, %arg6: memref<8x128xf32, #tpu.memory_space<vmem>>, %arg7: memref<128x1xf32, #tpu.memory_space<vmem>>, %arg8: memref<128x1xf32, #tpu.memory_space<vmem>>, %arg9: memref<128x1xf32, #tpu.memory_space<vmem>>) attributes {dimension_semantics = [#tpu.dimension_semantics<parallel>, #tpu.dimension_semantics<arbitrary>], iteration_bounds = array<i64: 3, 3>, scalar_prefetch = 0 : i64, scratch_operands = 3 : i64, tpu.core_type = #tpu.core_type<tc>, window_params = [{transform_indices = @transform_0, window_bounds = array<i64: 128, 64>}, {transform_indices = @transform_1, window_bounds = array<i64: 128, 64>}, {transform_indices = @transform_2, window_bounds = array<i64: 128, 128>}, {transform_indices = @transform_3, window_bounds = array<i64: 128, 128>}, {transform_indices = @transform_4, window_bounds = array<i64: 8, 128>}]} {
    %c0_i32 = arith.constant 0 : i32
    %0 = arith.cmpi eq, %arg1, %c0_i32 : i32
    %1 = arith.extui %0 : i1 to i32
    %c0_i32_0 = arith.constant 0 : i32
    %2 = arith.cmpi ne, %1, %c0_i32_0 : i32
    scf.if %2 {
      %cst_21 = arith.constant 0xFF800000 : f32
      %45 = vector.broadcast %cst_21 : f32 to vector<128x1xf32>
      %c0_22 = arith.constant 0 : index
      %c0_23 = arith.constant 0 : index
      %46 = vector.load %arg7[%c0_22, %c0_23] : memref<128x1xf32, #tpu.memory_space<vmem>>, vector<128x1xf32>
      tpu.vector_store %arg7[%c0_22, %c0_23], %45 {strides = array<i32>} : memref<128x1xf32, #tpu.memory_space<vmem>>, vector<128x1xf32>,
      %cst_24 = arith.constant 0.000000e+00 : f32
      %47 = vector.broadcast %cst_24 : f32 to vector<128x1xf32>
      %c0_25 = arith.constant 0 : index
      %c0_26 = arith.constant 0 : index
      %48 = vector.load %arg8[%c0_25, %c0_26] : memref<128x1xf32, #tpu.memory_space<vmem>>, vector<128x1xf32>
      tpu.vector_store %arg8[%c0_25, %c0_26], %47 {strides = array<i32>} : memref<128x1xf32, #tpu.memory_space<vmem>>, vector<128x1xf32>,
      %cst_27 = arith.constant 0.000000e+00 : f32
      %49 = vector.broadcast %cst_27 : f32 to vector<128x1xf32>
      %c0_28 = arith.constant 0 : index
      %c0_29 = arith.constant 0 : index
      %50 = vector.load %arg9[%c0_28, %c0_29] : memref<128x1xf32, #tpu.memory_space<vmem>>, vector<128x1xf32>
      tpu.vector_store %arg9[%c0_28, %c0_29], %49 {strides = array<i32>} : memref<128x1xf32, #tpu.memory_space<vmem>>, vector<128x1xf32>,
    } else {
    }
    %c0 = arith.constant 0 : index
    %c0_1 = arith.constant 0 : index
    %3 = vector.load %arg2[%c0, %c0_1] : memref<128x64xf32, #tpu.memory_space<vmem>>, vector<128x64xf32>
    %c0_2 = arith.constant 0 : index
    %c0_3 = arith.constant 0 : index
    %4 = vector.load %arg3[%c0_2, %c0_3] : memref<128x64xf32, #tpu.memory_space<vmem>>, vector<128x64xf32>
    %cst = arith.constant dense<0.000000e+00> : vector<128x128xf32>
    %5 = tpu.matmul %3, %4, %cst {dimension_numbers = #tpu.dot_dimension_numbers<[1], [1], [0], [0], [0, 0, 1, 0], [], []>} : vector<128x64xf32>, vector<128x64xf32>, vector<128x128xf32> -> vector<128x128xf32>
    %cst_4 = arith.constant 1.000000e+00 : f32
    %6 = vector.broadcast %cst_4 : f32 to vector<128x128xf32>
    %7 = arith.mulf %5, %6 : vector<128x128xf32>
    %cst_5 = arith.constant dense<0xFF800000> : vector<128xf32>
    %8 = vector.multi_reduction <maximumf>, %7, %cst_5 [1] : vector<128x128xf32> to vector<128xf32>
    %9 = vector.shape_cast %8 : vector<128xf32> to vector<128x1xf32>
    %cst_6 = arith.constant dense<0xFF800000> : vector<1xf32>
    %10 = vector.multi_reduction <maximumf>, %9, %cst_6 [0] : vector<128x1xf32> to vector<1xf32>
    %11 = vector.shape_cast %10 : vector<1xf32> to vector<1x1xf32>
    %12 = vector.broadcast %11 : vector<1x1xf32> to vector<128x128xf32>
    %13 = arith.subf %7, %12 : vector<128x128xf32>
    %14 = math.exp %13 : vector<128x128xf32>
    %cst_7 = arith.constant dense<0.000000e+00> : vector<128xf32>
    %15 = vector.multi_reduction <add>, %14, %cst_7 [1] : vector<128x128xf32> to vector<128xf32>
    %16 = vector.shape_cast %15 : vector<128xf32> to vector<128x1xf32>
    %cst_8 = arith.constant dense<0.000000e+00> : vector<128xf32>
    %17 = vector.multi_reduction <add>, %14, %cst_8 [0] : vector<128x128xf32> to vector<128xf32>
    %18 = vector.shape_cast %17 : vector<128xf32> to vector<1x128xf32>
    %c0_9 = arith.constant 0 : index
    %c0_10 = arith.constant 0 : index
    %19 = vector.load %arg7[%c0_9, %c0_10] : memref<128x1xf32, #tpu.memory_space<vmem>>, vector<128x1xf32>
    %20 = vector.broadcast %11 : vector<1x1xf32> to vector<128x1xf32>
    %21 = arith.maximumf %19, %20 : vector<128x1xf32>
    %c0_11 = arith.constant 0 : index
    %c0_12 = arith.constant 0 : index
    %22 = vector.load %arg8[%c0_11, %c0_12] : memref<128x1xf32, #tpu.memory_space<vmem>>, vector<128x1xf32>
    %23 = arith.subf %19, %21 : vector<128x1xf32>
    %24 = math.exp %23 : vector<128x1xf32>
    %25 = arith.mulf %22, %24 : vector<128x1xf32>
    %26 = vector.broadcast %11 : vector<1x1xf32> to vector<128x1xf32>
    %27 = arith.subf %26, %21 : vector<128x1xf32>
    %28 = math.exp %27 : vector<128x1xf32>
    %29 = arith.mulf %16, %28 : vector<128x1xf32>
    %30 = arith.addf %25, %29 : vector<128x1xf32>
    %c0_13 = arith.constant 0 : index
    %c0_14 = arith.constant 0 : index
    %31 = vector.load %arg8[%c0_13, %c0_14] : memref<128x1xf32, #tpu.memory_space<vmem>>, vector<128x1xf32>
    tpu.vector_store %arg8[%c0_13, %c0_14], %30 {strides = array<i32>} : memref<128x1xf32, #tpu.memory_space<vmem>>, vector<128x1xf32>,
    %c0_15 = arith.constant 0 : index
    %c0_16 = arith.constant 0 : index
    %32 = vector.load %arg7[%c0_15, %c0_16] : memref<128x1xf32, #tpu.memory_space<vmem>>, vector<128x1xf32>
    tpu.vector_store %arg7[%c0_15, %c0_16], %21 {strides = array<i32>} : memref<128x1xf32, #tpu.memory_space<vmem>>, vector<128x1xf32>,
    %33 = math.log %18 : vector<1x128xf32>
    %34 = vector.broadcast %11 : vector<1x1xf32> to vector<1x128xf32>
    %35 = arith.addf %34, %33 : vector<1x128xf32>
    %36 = vector.shape_cast %35 : vector<1x128xf32> to vector<1x128xf32>
    %37 = vector.broadcast %36 : vector<1x128xf32> to vector<8x128xf32>
    %c0_17 = arith.constant 0 : index
    %c0_18 = arith.constant 0 : index
    %38 = vector.load %arg6[%c0_17, %c0_18] : memref<8x128xf32, #tpu.memory_space<vmem>>, vector<8x128xf32>
    tpu.vector_store %arg6[%c0_17, %c0_18], %37 {strides = array<i32>} : memref<8x128xf32, #tpu.memory_space<vmem>>, vector<8x128xf32>,
    %39 = arith.cmpi eq, %arg0, %arg1 : i32
    %40 = arith.extui %39 : i1 to i32
    %c0_i32_19 = arith.constant 0 : i32
    %41 = arith.cmpi ne, %40, %c0_i32_19 : i32
    scf.if %41 {
      %45 = tpu.iota {dimensions = array<i32: 0>} : vector<128x128xi32>
      %46 = tpu.iota {dimensions = array<i32: 1>} : vector<128x128xi32>
      %47 = arith.cmpi eq, %45, %46 : vector<128x128xi32>
      %cst_21 = arith.constant 0.000000e+00 : f32
      %48 = vector.broadcast %cst_21 : f32 to vector<128x128xf32>
      %49 = arith.select %47, %7, %48 : vector<128x128xi1>, vector<128x128xf32>
      %cst_22 = arith.constant dense<0.000000e+00> : vector<128xf32>
      %50 = vector.multi_reduction <add>, %49, %cst_22 [1] : vector<128x128xf32> to vector<128xf32>
      %51 = vector.shape_cast %50 : vector<128xf32> to vector<128x1xf32>
      %c0_23 = arith.constant 0 : index
      %c0_24 = arith.constant 0 : index
      %52 = vector.load %arg9[%c0_23, %c0_24] : memref<128x1xf32, #tpu.memory_space<vmem>>, vector<128x1xf32>
      tpu.vector_store %arg9[%c0_23, %c0_24], %51 {strides = array<i32>} : memref<128x1xf32, #tpu.memory_space<vmem>>, vector<128x1xf32>,
    } else {
    }
    %c2_i32 = arith.constant 2 : i32
    %42 = arith.cmpi eq, %arg1, %c2_i32 : i32
    %43 = arith.extui %42 : i1 to i32
    %c0_i32_20 = arith.constant 0 : i32
    %44 = arith.cmpi ne, %43, %c0_i32_20 : i32
    scf.if %44 {
      %c0_21 = arith.constant 0 : index
      %c0_22 = arith.constant 0 : index
      %45 = vector.load %arg7[%c0_21, %c0_22] : memref<128x1xf32, #tpu.memory_space<vmem>>, vector<128x1xf32>
      %c0_23 = arith.constant 0 : index
      %c0_24 = arith.constant 0 : index
      %46 = vector.load %arg8[%c0_23, %c0_24] : memref<128x1xf32, #tpu.memory_space<vmem>>, vector<128x1xf32>
      %c0_25 = arith.constant 0 : index
      %c0_26 = arith.constant 0 : index
      %47 = vector.load %arg9[%c0_25, %c0_26] : memref<128x1xf32, #tpu.memory_space<vmem>>, vector<128x1xf32>
      %cst_27 = arith.constant 4.000000e-01 : f32
      %48 = vector.broadcast %cst_27 : f32 to vector<128x1xf32>
      %49 = arith.subf %47, %48 : vector<128x1xf32>
      %50 = arith.subf %49, %45 : vector<128x1xf32>
      %51 = math.exp %50 : vector<128x1xf32>
      %52 = arith.addf %51, %46 : vector<128x1xf32>
      %53 = arith.subf %47, %45 : vector<128x1xf32>
      %54 = math.exp %53 : vector<128x1xf32>
      %55 = arith.subf %52, %54 : vector<128x1xf32>
      %56 = math.log %55 : vector<128x1xf32>
      %57 = arith.addf %45, %56 : vector<128x1xf32>
      %58 = arith.subf %49, %57 : vector<128x1xf32>
      %59 = vector.shape_cast %58 : vector<128x1xf32> to vector<128x1xf32>
      %60 = vector.broadcast %59 : vector<128x1xf32> to vector<128x128xf32>
      %c0_28 = arith.constant 0 : index
      %c0_29 = arith.constant 0 : index
      %61 = vector.load %arg4[%c0_28, %c0_29] : memref<128x128xf32, #tpu.memory_space<vmem>>, vector<128x128xf32>
      tpu.vector_store %arg4[%c0_28, %c0_29], %60 {strides = array<i32>} : memref<128x128xf32, #tpu.memory_space<vmem>>, vector<128x128xf32>,
      %62 = vector.shape_cast %47 : vector<128x1xf32> to vector<128x1xf32>
      %63 = vector.broadcast %62 : vector<128x1xf32> to vector<128x128xf32>
      %c0_30 = arith.constant 0 : index
      %c0_31 = arith.constant 0 : index
      %64 = vector.load %arg5[%c0_30, %c0_31] : memref<128x128xf32, #tpu.memory_space<vmem>>, vector<128x128xf32>
      tpu.vector_store %arg5[%c0_30, %c0_31], %63 {strides = array<i32>} : memref<128x128xf32, #tpu.memory_space<vmem>>, vector<128x128xf32>,
    } else {
    }
    return
  }
  func.func @transform_0(%arg0: i32, %arg1: i32) -> (i32, i32) {
    %c0_i32 = arith.constant 0 : i32
    %c0_i32_0 = arith.constant 0 : i32
    return %arg0, %c0_i32 : i32, i32
  }
  func.func @transform_1(%arg0: i32, %arg1: i32) -> (i32, i32) {
    %c0_i32 = arith.constant 0 : i32
    %c0_i32_0 = arith.constant 0 : i32
    return %arg1, %c0_i32 : i32, i32
  }
  func.func @transform_2(%arg0: i32, %arg1: i32) -> (i32, i32) {
    %c0_i32 = arith.constant 0 : i32
    %c0_i32_0 = arith.constant 0 : i32
    return %arg0, %c0_i32 : i32, i32
  }
  func.func @transform_3(%arg0: i32, %arg1: i32) -> (i32, i32) {
    %c0_i32 = arith.constant 0 : i32
    %c0_i32_0 = arith.constant 0 : i32
    return %arg0, %c0_i32 : i32, i32
  }
  func.func @transform_4(%arg0: i32, %arg1: i32) -> (i32, i32) {
    %c0_i32 = arith.constant 0 : i32
    return %arg0, %arg1 : i32, i32
  }
}

</mosaic_0001>

<bundles_post_ra>
// kernel: tpu_custom_call.1
= control target key start
LH: loop header
LB: loop body
LE: loop exit
PB: predicated region body
PF: predicated region fallthrough
CT: control target
= control target key end

     0   :  { %s3472_s0 = inlined_call_operand.vmem [shape: f32[384,64], index: 0, kind: input, shape index: {}]   ;;  %s3473_s1 = inlined_call_operand.vmem [shape: f32[384,64], index: 1, kind: input, shape index: {}]   ;;  %s3474_s2 = inlined_call_operand.hbm [shape: f32[384,128], index: 2, kind: output, shape index: {0}]   ;;  %s3475_s3 = inlined_call_operand.hbm [shape: f32[384,128], index: 3, kind: output, shape index: {1}]   ;;  %s3476_s4 = inlined_call_operand.hbm [shape: f32[24,384], index: 4, kind: output, shape index: {2}]  }
   0x1   :  { %3489 = sst [smem:[#allocation23_spill]] %s3472_s0 }
   0x2   :  { %3490 = sst [smem:[#allocation24_spill]] %s3473_s1 }
   0x3   :  { %3491 = sst [smem:[#allocation25_spill]] %s3475_s3 }
   0x4   :  { %10 = vsyncpa [#allocation6], 0 }
   0x5   :  { %12 = vsyncpa [#allocation6 + $0x1], 0 }
   0x6   :  { %13 = vsyncpa [#allocation8], 0 }
   0x7   :  { %15 = vsyncpa [#allocation8 + $0x1], 0  ;;  %s2435_s15 = smov 0   ;;  %s2437_s16 = smov 0  }
   0x8   :  { %s2439_s17 = smov 0   ;;  %s2441_s18 = smov 0  }
   0x9   :  { %s2443_s19 = smov 0   ;;  %s2445_s20 = smov 0  }
   0xa   :  { %s2447_s21 = smov 0   ;;  %s2449_s22 = smov 0  }
   0xb   :  { %s2451_s23 = smov 0   ;;  %s2453_s24 = smov 0  }
   0xc   :  { %s2455_s25 = smov 0  }
   0xd LB: > { %3492 = sst [smem:[#allocation13_spill]] %s2380_s20  ;;  %s3478_s26 = sadd.s32 4294967295, %s2400_s25   ;;  %s2400_s25 = sphi %s2455_s25, %s21_s25   ;;  %s2396_s24 = sphi %s2453_s24, %s3543_s24   ;;  %s2392_s23 = sphi %s2451_s23, %s3542_s23   ;;  %s2388_s22 = sphi %s2449_s22, %s3541_s22   ;;  %s2384_s21 = sphi %s2447_s21, %s3540_s21   ;;  %s2380_s20 = sphi %s2445_s20, %s3539_s20   ;;  %s2376_s19 = sphi %s2443_s19, %s3548_s19   ;;  %s2372_s18 = sphi %s2441_s18, %s3547_s18   ;;  %s2368_s17 = sphi %s2439_s17, %s3546_s17   ;;  %s2364_s16 = sphi %s2437_s16, %s3545_s16   ;;  %s2360_s15 = sphi %s2435_s15, %s3544_s15  }
   0xe   : > { %3493 = sst [smem:[#allocation14_spill]] %s2392_s23  ;;  %s3477_s27 = sadd.s32 4294967294, %s2400_s25  }
   0xf   : > { %3494 = sst [smem:[#allocation15_spill]] %s2396_s24  ;;  %s30_s28 = sadd.s32 1, %s2392_s23 }
  0x10   : > { %s33_s29 = sadd.s32 1, %s2396_s24  ;;  %p31_p0 = scmp.ge.s32.totalorder %s30_s28, 3 }
  0x11   : > { %s92_s30 = sadd.s32 1, %s2380_s20  ;;  %p102_p1 = scmp.ne.s32.totalorder %s2380_s20, %s2376_s19 }
  0x12   : > { %p2499_p2 = scmp.eq.s32.totalorder %s3478_s26, 8  ;;  %s3550_s28 = smov (%p31_p0, %s30_s28), 0 }
  0x13   : > { %3496 = sst [smem:[#allocation16_spill]] %s3550_s28  ;;  %s3552_s29 = smov (!%p31_p0, %s33_s29), %s2396_s24 }
  0x14   : > { %p2508_p3 = por %p2499_p2, %p102_p1  ;;  %p108_p4 = scmp.ne.s32.totalorder %s2376_s19, %s2372_s18 }
  0x15   : > { %p35_p5 = scmp.ge.s32.totalorder %s3552_s29, 3  ;;  %p2516_p6 = scmp.eq.s32.totalorder %s3477_s27, 8 }
  0x16   : > { %s142_s8 = ssub.s32 %s2392_s23, %s3550_s28  ;;  %s146_s9 = sadd.s32 1, %s2368_s17 }
  0x17   : > { %s3554_s29 = smov (%p35_p5, %s3552_s29), 0  ;;  %p2527_p7 = por %p2516_p6, %p108_p4 }
  0x18   : > { %3499 = sst [smem:[#allocation17_spill]] %s3554_s29  ;;  %p156_p8 = scmp.ne.s32.totalorder %s2368_s17, %s2364_s16 }
  0x19   : > { %s89_s11 = ssub.s32 %s2396_s24, %s3554_s29  ;;  %p162_p9 = scmp.ne.s32.totalorder %s2364_s16, %s2360_s15 }
  0x1a   : > { %p90_p10 = scmp.eq.s32.totalorder %s89_s11, 0  ;;  %s143_s12 = sor.u32 %s142_s8, %s89_s11 }
  0x1b   : > { %p144_p11 = scmp.eq.s32.totalorder %s143_s12, 0  ;;  %p2539_p12 = por %p156_p8, %p2499_p2 }
  0x1c   : > { %s2544_s14 = scalar_select %p90_p10, %s2380_s20, %s92_s30  }
  0x1d   : > { %s2547_s27 = scalar_select %p144_p11, %s2368_s17, %s146_s9  }
  0x1e   : > { %3502 = sst [smem:[#allocation18_spill]] %s2544_s14  ;;  %p2551_p13 = por %p162_p9, %p2516_p6 }
  0x1f   : > { %3503 = sst [smem:[#allocation19_spill]] %s2547_s27  ;;  %p1726_p0 = scmp.ge.s32.totalorder %s2400_s25, 1 }
  0x20   : > { %s3504_s26 = scalar_select %p2551_p13, 1, 0 }
  0x21   : > { %p199_p1 = scmp.lt.s32.totalorder %s2400_s25, 10 }
  0x23   : > { %p200_p4 = pnand %p1726_p0, %p199_p1 }
  0x25   : > { %203 = sbr.rel (%p200_p4) target bundleno = 1195 (0x4ab), region = 28 }
  0x2a   : > { %s3483_s15 = sand.u32 1, %s2376_s19   ;;  %s237_s5 = sand.u32 1, %s2364_s16  }
  0x2b   : > { %s1727_s30 = sshll.u32 %s3483_s15, 7  ;;  %s2561_s8 = sshll.u32 %s237_s5, 3 }
  0x2c   : > { %s1730_s7 = sshll.u32 %s2388_s22, 4  ;;  %s1732_s9 = sshll.u32 %s2384_s21, 4 }
  0x2d   : > { %p241_p2 = scmp.lt.s32.totalorder %s1730_s7, 47  ;;  %p247_p5 = scmp.lt.s32.totalorder %s1732_s9, 47 }
  0x2e   : > { %s3505_s0 = sld [smem:[#allocation23_spill]]  ;;  %s2575_s5 = scalar_lea.vmem [#allocation5], %s1727_s30 }
  0x2f   : > { %s3556_s7 = smov (!%p241_p2, %s1730_s7), 47  ;;  %s3558_s9 = smov (!%p247_p5, %s1732_s9), 47 }
  0x30   : > { %s1731_s11 = sshll.u32 %s3556_s7, 3  ;;  %s1733_s24 = sshll.u32 %s3558_s9, 3 }
  0x31   : > { %s3506_s1 = sld [smem:[#allocation24_spill]]  ;;  %s2577_s20 = scalar_lea.vmem [#allocation7], %s1727_s30 }
  0x32   : > { %s3488_s27 = scalar_lea.vmem [#allocation9], %s2561_s8  ;;  %p1734_p6 = scmp.ne.s32.totalorder %s2384_s21, 0 }
  0x34   : > { %s2568_s28 = scalar_lea.vmem %s3505_s0, %s1731_s11  ;;  %257 = sbr.rel (%p1734_p6) target bundleno = 82 (0x52), region = 32 }
  0x37   : > { %s2573_s15 = scalar_lea.vmem %s3506_s1, %s1733_s24 }
  0x39   : > { %vm258_vm0 = vcmask 7168   ;;  %v2402_v0 = vmov -inf   ;;  %v2403_v1 = vmov 0.0  }
  0x3a   : > { %259 = vst.msk [vmem:[#allocation2] sm:$0xff] %vm258_vm0, %v2402_v0  ;;  %260 = vst.msk [vmem:[#allocation2 + $0x8] sm:$0xff] %vm258_vm0, %v2402_v0 }
  0x3b   : > { %261 = vst.msk [vmem:[#allocation2 + $0x10] sm:$0xff] %vm258_vm0, %v2402_v0  ;;  %262 = vst.msk [vmem:[#allocation2 + $0x18] sm:$0xff] %vm258_vm0, %v2402_v0 }
  0x3c   : > { %263 = vst.msk [vmem:[#allocation2 + $0x20] sm:$0xff] %vm258_vm0, %v2402_v0  ;;  %264 = vst.msk [vmem:[#allocation2 + $0x28] sm:$0xff] %vm258_vm0, %v2402_v0 }
  0x3d   : > { %265 = vst.msk [vmem:[#allocation2 + $0x30] sm:$0xff] %vm258_vm0, %v2402_v0  ;;  %266 = vst.msk [vmem:[#allocation2 + $0x38] sm:$0xff] %vm258_vm0, %v2402_v0 }
  0x3e   : > { %267 = vst.msk [vmem:[#allocation2 + $0x40] sm:$0xff] %vm258_vm0, %v2402_v0  ;;  %268 = vst.msk [vmem:[#allocation2 + $0x48] sm:$0xff] %vm258_vm0, %v2402_v0 }
  0x3f   : > { %269 = vst.msk [vmem:[#allocation2 + $0x50] sm:$0xff] %vm258_vm0, %v2402_v0  ;;  %270 = vst.msk [vmem:[#allocation2 + $0x58] sm:$0xff] %vm258_vm0, %v2402_v0 }
  0x40   : > { %271 = vst.msk [vmem:[#allocation2 + $0x60] sm:$0xff] %vm258_vm0, %v2402_v0  ;;  %272 = vst.msk [vmem:[#allocation2 + $0x68] sm:$0xff] %vm258_vm0, %v2402_v0 }
  0x41   : > { %273 = vst.msk [vmem:[#allocation2 + $0x70] sm:$0xff] %vm258_vm0, %v2402_v0  ;;  %274 = vst.msk [vmem:[#allocation2 + $0x78] sm:$0xff] %vm258_vm0, %v2402_v0 }
  0x42   : > { %275 = vst.msk [vmem:[#allocation3] sm:$0xff] %vm258_vm0, %v2403_v1  ;;  %276 = vst.msk [vmem:[#allocation3 + $0x8] sm:$0xff] %vm258_vm0, %v2403_v1 }
  0x43   : > { %277 = vst.msk [vmem:[#allocation3 + $0x10] sm:$0xff] %vm258_vm0, %v2403_v1  ;;  %278 = vst.msk [vmem:[#allocation3 + $0x18] sm:$0xff] %vm258_vm0, %v2403_v1 }
  0x44   : > { %279 = vst.msk [vmem:[#allocation3 + $0x20] sm:$0xff] %vm258_vm0, %v2403_v1  ;;  %280 = vst.msk [vmem:[#allocation3 + $0x28] sm:$0xff] %vm258_vm0, %v2403_v1 }
  0x45   : > { %281 = vst.msk [vmem:[#allocation3 + $0x30] sm:$0xff] %vm258_vm0, %v2403_v1  ;;  %282 = vst.msk [vmem:[#allocation3 + $0x38] sm:$0xff] %vm258_vm0, %v2403_v1 }
  0x46   : > { %283 = vst.msk [vmem:[#allocation3 + $0x40] sm:$0xff] %vm258_vm0, %v2403_v1  ;;  %284 = vst.msk [vmem:[#allocation3 + $0x48] sm:$0xff] %vm258_vm0, %v2403_v1 }
  0x47   : > { %285 = vst.msk [vmem:[#allocation3 + $0x50] sm:$0xff] %vm258_vm0, %v2403_v1  ;;  %286 = vst.msk [vmem:[#allocation3 + $0x58] sm:$0xff] %vm258_vm0, %v2403_v1 }
  0x48   : > { %287 = vst.msk [vmem:[#allocation3 + $0x60] sm:$0xff] %vm258_vm0, %v2403_v1  ;;  %288 = vst.msk [vmem:[#allocation3 + $0x68] sm:$0xff] %vm258_vm0, %v2403_v1 }
  0x49   : > { %289 = vst.msk [vmem:[#allocation3 + $0x70] sm:$0xff] %vm258_vm0, %v2403_v1  ;;  %290 = vst.msk [vmem:[#allocation3 + $0x78] sm:$0xff] %vm258_vm0, %v2403_v1 }
  0x4a   : > { %291 = vst.msk [vmem:[#allocation4] sm:$0xff] %vm258_vm0, %v2403_v1  ;;  %292 = vst.msk [vmem:[#allocation4 + $0x8] sm:$0xff] %vm258_vm0, %v2403_v1 }
  0x4b   : > { %293 = vst.msk [vmem:[#allocation4 + $0x10] sm:$0xff] %vm258_vm0, %v2403_v1  ;;  %294 = vst.msk [vmem:[#allocation4 + $0x18] sm:$0xff] %vm258_vm0, %v2403_v1 }
  0x4c   : > { %295 = vst.msk [vmem:[#allocation4 + $0x20] sm:$0xff] %vm258_vm0, %v2403_v1  ;;  %296 = vst.msk [vmem:[#allocation4 + $0x28] sm:$0xff] %vm258_vm0, %v2403_v1 }
  0x4d   : > { %297 = vst.msk [vmem:[#allocation4 + $0x30] sm:$0xff] %vm258_vm0, %v2403_v1  ;;  %298 = vst.msk [vmem:[#allocation4 + $0x38] sm:$0xff] %vm258_vm0, %v2403_v1 }
  0x4e   : > { %299 = vst.msk [vmem:[#allocation4 + $0x40] sm:$0xff] %vm258_vm0, %v2403_v1  ;;  %300 = vst.msk [vmem:[#allocation4 + $0x48] sm:$0xff] %vm258_vm0, %v2403_v1 }
  0x4f   : > { %301 = vst.msk [vmem:[#allocation4 + $0x50] sm:$0xff] %vm258_vm0, %v2403_v1  ;;  %302 = vst.msk [vmem:[#allocation4 + $0x58] sm:$0xff] %vm258_vm0, %v2403_v1 }
  0x50   : > { %303 = vst.msk [vmem:[#allocation4 + $0x60] sm:$0xff] %vm258_vm0, %v2403_v1  ;;  %304 = vst.msk [vmem:[#allocation4 + $0x68] sm:$0xff] %vm258_vm0, %v2403_v1 }
  0x51   : > { %305 = vst.msk [vmem:[#allocation4 + $0x70] sm:$0xff] %vm258_vm0, %v2403_v1  ;;  %306 = vst.msk [vmem:[#allocation4 + $0x78] sm:$0xff] %vm258_vm0, %v2403_v1 }
  0x52 PF: > { %v338_v2 = vld [vmem:[%s2573_s15 + $0x78] sm:$0xff]  ;;  %vm339_vm1 = vcmask 523264   ;;  %v337_v3 = vld [vmem:[%s2573_s15 + $0x70] sm:$0xff]  ;;  %v336_v4 = vld [vmem:[%s2573_s15 + $0x68] sm:$0xff]  ;;  %vm927_vm2 = vcmask 7168   ;;  %p1767_p8 = scmp.ne.s32.totalorder %s2388_s22, %s2384_s21 }
  0x53   : > { %1829 = vmatprep.subr.msk.mxu0 %vm339_vm1, %v338_v2  ;;  %1885 = vmatprep.subr.msk.mxu1 %vm339_vm1, %v338_v2  ;;  %v307_v5 = vld [vmem:[%s2568_s28] sm:$0xff]  ;;  %v334_v8 = vld [vmem:[%s2573_s15 + $0x58] sm:$0xff]  ;;  %v333_v9 = vld [vmem:[%s2573_s15 + $0x50] sm:$0xff] }
  0x54   : > { %1830 = vmatpush3.xpose.msk.msra.mxu0 %vm339_vm1, %v338_v2  ;;  %1901 = vmatpush3.xpose.msk.msra.mxu1 %vm339_vm1, %v338_v2  ;;  %v315_v6 = vld [vmem:[%s2568_s28 + $0x40] sm:$0xff]  ;;  %v332_v10 = vld [vmem:[%s2573_s15 + $0x48] sm:$0xff]  ;;  %v330_v12 = vld [vmem:[%s2573_s15 + $0x38] sm:$0xff] }
  0x55   : > { %1831 = vmatprep.subr.msk.mxu0 %vm339_vm1, %v337_v3  ;;  %1886 = vmatprep.subr.msk.mxu1 %vm339_vm1, %v337_v3  ;;  %v335_v7 = vld [vmem:[%s2573_s15 + $0x60] sm:$0xff]  ;;  %v329_v13 = vld [vmem:[%s2573_s15 + $0x30] sm:$0xff]  ;;  %v328_v14 = vld [vmem:[%s2573_s15 + $0x28] sm:$0xff] }
  0x56   : > { %1861 = vmatprep.mubr.msk.f32.mxu0 %vm339_vm1, %v307_v5  ;;  %1873 = vmatprep.mubr.msk.f32.mxu1 %vm339_vm1, %v315_v6  ;;  %v331_v11 = vld [vmem:[%s2573_s15 + $0x40] sm:$0xff]  ;;  %v326_v16 = vld [vmem:[%s2573_s15 + $0x18] sm:$0xff]  ;;  %v325_v17 = vld [vmem:[%s2573_s15 + $0x10] sm:$0xff] }
  0x57   : > { %v327_v15 = vld [vmem:[%s2573_s15 + $0x20] sm:$0xff]  ;;  %v324_v18 = vld [vmem:[%s2573_s15 + $0x8] sm:$0xff]  ;;  %v309_v22 = vld [vmem:[%s2568_s28 + $0x10] sm:$0xff] }
  0x58   : > { %1832 = vmatpush3.xpose.msk.msra.mxu0 %vm339_vm1, %v337_v3  ;;  %1902 = vmatpush3.xpose.msk.msra.mxu1 %vm339_vm1, %v337_v3  ;;  %v323_v19 = vld [vmem:[%s2573_s15] sm:$0xff]  ;;  %v308_v20 = vld [vmem:[%s2568_s28 + $0x8] sm:$0xff]  ;;  %v317_v23 = vld [vmem:[%s2568_s28 + $0x50] sm:$0xff] }
  0x59   : > { %1833 = vmatprep.subr.msk.mxu0 %vm339_vm1, %v336_v4  ;;  %1887 = vmatprep.subr.msk.mxu1 %vm339_vm1, %v336_v4  ;;  %v316_v21 = vld [vmem:[%s2568_s28 + $0x48] sm:$0xff]  ;;  %v310_v24 = vld [vmem:[%s2568_s28 + $0x18] sm:$0xff]  ;;  %v311_v26 = vld [vmem:[%s2568_s28 + $0x20] sm:$0xff] }
  0x5a   : > { %v318_v25 = vld [vmem:[%s2568_s28 + $0x58] sm:$0xff]  ;;  %v319_v27 = vld [vmem:[%s2568_s28 + $0x60] sm:$0xff]  ;;  %v312_v28 = vld [vmem:[%s2568_s28 + $0x28] sm:$0xff] }
  0x5b   : > { %v320_v29 = vld [vmem:[%s2568_s28 + $0x68] sm:$0xff]  ;;  %v313_v30 = vld [vmem:[%s2568_s28 + $0x30] sm:$0xff]  ;;  %v314_v32 = vld [vmem:[%s2568_s28 + $0x38] sm:$0xff] }
  0x5c   : > { %1834 = vmatpush3.xpose.msk.msra.mxu0 %vm339_vm1, %v336_v4  ;;  %1903 = vmatpush3.xpose.msk.msra.mxu1 %vm339_vm1, %v336_v4  ;;  %v321_v31 = vld [vmem:[%s2568_s28 + $0x70] sm:$0xff]  ;;  %v322_v33 = vld [vmem:[%s2568_s28 + $0x78] sm:$0xff] }
  0x5d   : > { %1835 = vmatprep.subr.msk.mxu0 %vm339_vm1, %v335_v7  ;;  %1888 = vmatprep.subr.msk.mxu1 %vm339_vm1, %v335_v7 }
  0x60   : > { %1836 = vmatpush3.xpose.msk.msra.mxu0 %vm339_vm1, %v335_v7  ;;  %1904 = vmatpush3.xpose.msk.msra.mxu1 %vm339_vm1, %v335_v7 }
  0x61   : > { %1837 = vmatprep.subr.msk.mxu0 %vm339_vm1, %v334_v8  ;;  %1889 = vmatprep.subr.msk.mxu1 %vm339_vm1, %v334_v8 }
  0x64   : > { %1838 = vmatpush3.xpose.msk.msra.mxu0 %vm339_vm1, %v334_v8  ;;  %1905 = vmatpush3.xpose.msk.msra.mxu1 %vm339_vm1, %v334_v8 }
  0x65   : > { %1839 = vmatprep.subr.msk.mxu0 %vm339_vm1, %v333_v9  ;;  %1890 = vmatprep.subr.msk.mxu1 %vm339_vm1, %v333_v9 }
  0x68   : > { %1840 = vmatpush3.xpose.msk.msra.mxu0 %vm339_vm1, %v333_v9  ;;  %1906 = vmatpush3.xpose.msk.msra.mxu1 %vm339_vm1, %v333_v9 }
  0x69   : > { %1841 = vmatprep.subr.msk.mxu0 %vm339_vm1, %v332_v10  ;;  %1891 = vmatprep.subr.msk.mxu1 %vm339_vm1, %v332_v10 }
  0x6c   : > { %1842 = vmatpush3.xpose.msk.msra.mxu0 %vm339_vm1, %v332_v10  ;;  %1907 = vmatpush3.xpose.msk.msra.mxu1 %vm339_vm1, %v332_v10 }
  0x6d   : > { %1843 = vmatprep.subr.msk.mxu0 %vm339_vm1, %v331_v11  ;;  %1892 = vmatprep.subr.msk.mxu1 %vm339_vm1, %v331_v11 }
  0x70   : > { %1844 = vmatpush3.xpose.msk.msra.mxu0 %vm339_vm1, %v331_v11  ;;  %1908 = vmatpush3.xpose.msk.msra.mxu1 %vm339_vm1, %v331_v11 }
  0x71   : > { %1845 = vmatprep.subr.msk.mxu0 %vm339_vm1, %v330_v12  ;;  %1893 = vmatprep.subr.msk.mxu1 %vm339_vm1, %v330_v12 }
  0x74   : > { %1846 = vmatpush3.xpose.msk.msra.mxu0 %vm339_vm1, %v330_v12  ;;  %1909 = vmatpush3.xpose.msk.msra.mxu1 %vm339_vm1, %v330_v12 }
  0x75   : > { %1847 = vmatprep.subr.msk.mxu0 %vm339_vm1, %v329_v13  ;;  %1894 = vmatprep.subr.msk.mxu1 %vm339_vm1, %v329_v13 }
  0x78   : > { %1848 = vmatpush3.xpose.msk.msra.mxu0 %vm339_vm1, %v329_v13  ;;  %1910 = vmatpush3.xpose.msk.msra.mxu1 %vm339_vm1, %v329_v13 }
  0x79   : > { %1849 = vmatprep.subr.msk.mxu0 %vm339_vm1, %v328_v14  ;;  %1895 = vmatprep.subr.msk.mxu1 %vm339_vm1, %v328_v14 }
  0x7c   : > { %1850 = vmatpush3.xpose.msk.msra.mxu0 %vm339_vm1, %v328_v14  ;;  %1911 = vmatpush3.xpose.msk.msra.mxu1 %vm339_vm1, %v328_v14 }
  0x7d   : > { %1851 = vmatprep.subr.msk.mxu0 %vm339_vm1, %v327_v15  ;;  %1896 = vmatprep.subr.msk.mxu1 %vm339_vm1, %v327_v15 }
  0x80   : > { %1852 = vmatpush3.xpose.msk.msra.mxu0 %vm339_vm1, %v327_v15  ;;  %1912 = vmatpush3.xpose.msk.msra.mxu1 %vm339_vm1, %v327_v15 }
  0x81   : > { %1853 = vmatprep.subr.msk.mxu0 %vm339_vm1, %v326_v16  ;;  %1897 = vmatprep.subr.msk.mxu1 %vm339_vm1, %v326_v16 }
  0x84   : > { %1854 = vmatpush3.xpose.msk.msra.mxu0 %vm339_vm1, %v326_v16  ;;  %1913 = vmatpush3.xpose.msk.msra.mxu1 %vm339_vm1, %v326_v16 }
  0x85   : > { %1855 = vmatprep.subr.msk.mxu0 %vm339_vm1, %v325_v17  ;;  %1898 = vmatprep.subr.msk.mxu1 %vm339_vm1, %v325_v17 }
  0x88   : > { %1856 = vmatpush3.xpose.msk.msra.mxu0 %vm339_vm1, %v325_v17  ;;  %1914 = vmatpush3.xpose.msk.msra.mxu1 %vm339_vm1, %v325_v17 }
  0x89   : > { %1857 = vmatprep.subr.msk.mxu0 %vm339_vm1, %v324_v18  ;;  %1899 = vmatprep.subr.msk.mxu1 %vm339_vm1, %v324_v18 }
  0x8c   : > { %1858 = vmatpush3.xpose.msk.msra.mxu0 %vm339_vm1, %v324_v18  ;;  %1915 = vmatpush3.xpose.msk.msra.mxu1 %vm339_vm1, %v324_v18 }
  0x8d   : > { %1859 = vmatprep.subr.msk.mxu0 %vm339_vm1, %v323_v19  ;;  %1900 = vmatprep.subr.msk.mxu1 %vm339_vm1, %v323_v19 }
  0x90   : > { %1860 = vmatpush3.xpose.msk.msra.mxu0 %vm339_vm1, %v323_v19  ;;  %1916 = vmatpush3.xpose.msk.msra.mxu1 %vm339_vm1, %v323_v19 }
  0x93   : > { %1862 = vmatmul.mubr.msk.f32.vlgmr.msra.gmra.mxu0 %vm339_vm1, %v308_v20  ;;  %1874 = vmatmul.mubr.msk.f32.vlgmr.msra.gmra.mxu1 %vm339_vm1, %v316_v21 }
  0x94   : > { %1864 = vmatprep.mubr.msk.f32.mxu0 %vm339_vm1, %v309_v22  ;;  %1876 = vmatprep.mubr.msk.f32.mxu1 %vm339_vm1, %v317_v23 }
  0x97   : > { %1865 = vmatmul.mubr.msk.f32.gmra.mxu0 %vm339_vm1, %v310_v24  ;;  %1877 = vmatmul.mubr.msk.f32.gmra.mxu1 %vm339_vm1, %v318_v25 }
  0x98   : > { %1867 = vmatprep.mubr.msk.f32.mxu0 %vm339_vm1, %v311_v26  ;;  %1879 = vmatprep.mubr.msk.f32.mxu1 %vm339_vm1, %v319_v27 }
  0x9b   : > { %1868 = vmatmul.mubr.msk.f32.gmra.mxu0 %vm339_vm1, %v312_v28  ;;  %1880 = vmatmul.mubr.msk.f32.gmra.mxu1 %vm339_vm1, %v320_v29 }
  0x9c   : > { %1870 = vmatprep.mubr.msk.f32.mxu0 %vm339_vm1, %v313_v30  ;;  %1882 = vmatprep.mubr.msk.f32.mxu1 %vm339_vm1, %v321_v31 }
  0x9f   : > { %1871 = vmatmul.mubr.msk.f32.gmra.mxu0 %vm339_vm1, %v314_v32  ;;  %1883 = vmatmul.mubr.msk.f32.gmra.mxu1 %vm339_vm1, %v322_v33  ;;  %v2803_v33 = vld [vmem:[#allocation2 + $0x8] sm:$0xff] }
 0x153   : > { %v2741_v34 = vpop.f32.mrf.mxu0  ;;  %v2743_v35 = vpop.f32.mrf.mxu1 }
 0x154   : > { %599 = vmax.xlane.f32.xlu1 %v2743_v35  ;;  %583 = vmax.xlane.f32.xlu0 %v2741_v34 }
 0x155   : > { %v2747_v36 = vpop.f32.mrf.mxu0  ;;  %v2753_v38 = vpop.f32.mrf.mxu1 }
 0x157   : > { %v2749_v37 = vpop.f32.mrf.mxu0  ;;  %v2755_v39 = vpop.f32.mrf.mxu1 }
 0x158   : > { %581 = vmax.xlane.f32.xlu0 %v2747_v36  ;;  %587 = vmax.xlane.f32.xlu1 %v2749_v37 }
 0x159   : > { %v2759_v40 = vpop.f32.mrf.mxu0  ;;  %v2761_v41 = vpop.f32.mrf.mxu1 }
 0x15b   : > { %v2763_v42 = vpop.f32.mrf.mxu0  ;;  %v2769_v44 = vpop.f32.mrf.mxu1 }
 0x15c   : > { %597 = vmax.xlane.f32.xlu0 %v2753_v38  ;;  %603 = vmax.xlane.f32.xlu1 %v2755_v39 }
 0x15d   : > { %v2767_v43 = vpop.f32.mrf.mxu0  ;;  %v2773_v45 = vpop.f32.mrf.mxu1 }
 0x15f   : > { %v2775_v46 = vpop.f32.mrf.mxu0  ;;  %v2781_v48 = vpop.f32.mrf.mxu1 }
 0x160   : > { %601 = vmax.xlane.f32.xlu0 %v2761_v41  ;;  %585 = vmax.xlane.f32.xlu1 %v2759_v40  ;;  %3507 = vst [vmem:[#allocation20_spill] sm:$0xff] %v2781_v48 }
 0x161   : > { %v2779_v47 = vpop.f32.mrf.mxu0  ;;  %v2785_v49 = vpop.f32.mrf.mxu1 }
 0x162   : > { %3508 = vst [vmem:[#allocation21_spill] sm:$0xff] %v2785_v49 }
 0x164   : > { %591 = vmax.xlane.f32.xlu1 %v2763_v42  ;;  %589 = vmax.xlane.f32.xlu0 %v2767_v43 }
 0x168   : > { %607 = vmax.xlane.f32.xlu1 %v2769_v44  ;;  %605 = vmax.xlane.f32.xlu0 %v2773_v45 }
 0x16c   : > { %595 = vmax.xlane.f32.xlu1 %v2775_v46  ;;  %593 = vmax.xlane.f32.xlu0 %v2779_v47 }
 0x170   : > { %611 = vmax.xlane.f32.xlu1 %v2781_v48  ;;  %609 = vmax.xlane.f32.xlu0 %v2785_v49 }
 0x1dd   : > { %v600_v50 = vpop.xlane.xlu1 %599  ;;  %v584_v51 = vpop.xlane.xlu0 %583 }
 0x1e1   : > { %v582_v52 = vpop.xlane.xlu0 %581  ;;  %v588_v53 = vpop.xlane.xlu1 %587 }
 0x1e5   : > { %v598_v54 = vpop.xlane.xlu0 %597  ;;  %v604_v55 = vpop.xlane.xlu1 %603 }
 0x1e9   : > { %v602_v56 = vpop.xlane.xlu0 %601  ;;  %v586_v57 = vpop.xlane.xlu1 %585 }
 0x1ed   : > { %v592_v58 = vpop.xlane.xlu1 %591  ;;  %v590_v59 = vpop.xlane.xlu0 %589 }
 0x1ee   : > { %v614_v60 = vmax.f32 %v584_v51, %v592_v58  ;;  %v613_v61 = vmax.f32 %v582_v52, %v590_v59 }
 0x1f0   : > { %v618_v0 = vmax.f32 %v614_v60, %v600_v50  ;;  %v617_v1 = vmax.f32 %v613_v61, %v598_v54  ;;  %v2805_v50 = vld [vmem:[#allocation2] sm:$0xff]  ;;  %v2811_v54 = vld [vmem:[#allocation2 + $0x10] sm:$0xff] }
 0x1f1   : > { %v608_v62 = vpop.xlane.xlu1 %607  ;;  %v606_v63 = vpop.xlane.xlu0 %605 }
 0x1f2   : > { %v622_v6 = vmax.f32 %v618_v0, %v608_v62  ;;  %v621_v7 = vmax.f32 %v617_v1, %v606_v63 }
 0x1f4   : > { %v625_v14 = vmax.f32 %v621_v7, %v622_v6  ;;  %v2857_v6 = vld [vmem:[#allocation2 + $0x20] sm:$0xff]  ;;  %v2859_v7 = vld [vmem:[#allocation2 + $0x38] sm:$0xff] }
 0x1f5   : > { %v596_v2 = vpop.xlane.xlu1 %595  ;;  %v594_v3 = vpop.xlane.xlu0 %593 }
 0x1f6   : > { %v616_v4 = vmax.f32 %v588_v53, %v596_v2  ;;  %v615_v5 = vmax.f32 %v586_v57, %v594_v3  ;;  %v2809_v53 = vld [vmem:[#allocation2 + $0x18] sm:$0xff] }
 0x1f8   : > { %v620_v8 = vmax.f32 %v616_v4, %v604_v55  ;;  %v619_v9 = vmax.f32 %v615_v5, %v602_v56  ;;  %v2813_v55 = vld [vmem:[#allocation2 + $0x28] sm:$0xff] }
 0x1f9   : > { %v612_v10 = vpop.xlane.xlu1 %611  ;;  %v610_v11 = vpop.xlane.xlu0 %609 }
 0x1fa   : > { %v624_v12 = vmax.f32 %v620_v8, %v612_v10  ;;  %v623_v13 = vmax.f32 %v619_v9, %v610_v11 }
 0x1fc   : > { %v626_v15 = vmax.f32 %v623_v13, %v624_v12 }
 0x1fe   : > { %v627_v16 = vmax.f32 %v625_v14, %v626_v15 }
 0x200   : > { %v628_v17 = vrot.slane %v627_v16, 4 }
 0x202   : > { %v629_v18 = vmax.f32 %v627_v16, %v628_v17  ;;  %v2877_v17 = vld [vmem:[#allocation2 + $0x30] sm:$0xff] }
 0x204   : > { %v630_v19 = vrot.slane %v629_v18, 2 }
 0x206   : > { %v631_v20 = vmax.f32 %v629_v18, %v630_v19 }
 0x208   : > { %v632_v21 = vrot.slane %v631_v20, 1 }
 0x20a   : > { %v2789_v22 = vmax.f32 %v631_v20, %v632_v21 }
 0x20c   : > { %v635_v23 = vsub.f32 %v2741_v34, %v2789_v22  ;;  %v634_v24 = vsub.f32 %v2747_v36, %v2789_v22  ;;  %v637_v25 = vsub.f32 %v2749_v37, %v2789_v22  ;;  %v636_v26 = vsub.f32 %v2759_v40, %v2789_v22 }
 0x20d   : > { %v638_v30 = vsub.f32 %v2767_v43, %v2789_v22  ;;  %v639_v32 = vsub.f32 %v2763_v42, %v2789_v22  ;;  %v640_v52 = vsub.f32 %v2779_v47, %v2789_v22  ;;  %v641_v57 = vsub.f32 %v2775_v46, %v2789_v22 }
 0x20e   : > { %v652_v27 = vmul.f32 1.442695, %v635_v23  ;;  %v650_v28 = vmul.f32 1.442695, %v634_v24  ;;  %v654_v29 = vmul.f32 1.442695, %v636_v26  ;;  %v643_v58 = vsub.f32 %v2743_v35, %v2789_v22 }
 0x20f   : > { %v656_v31 = vmul.f32 1.442695, %v637_v25  ;;  %v658_v51 = vmul.f32 1.442695, %v638_v30  ;;  %v660_v56 = vmul.f32 1.442695, %v639_v32  ;;  %v2821_v59 = vmax.f32 %v2803_v33, %v2789_v22 }
 0x210   : > { %2028 = vpow2.f32 %v652_v27  ;;  %v2825_v60 = vmax.f32 %v2805_v50, %v2789_v22  ;;  %v642_v61 = vsub.f32 %v2753_v38, %v2789_v22  ;;  %v2831_v62 = vmax.f32 %v2809_v53, %v2789_v22  ;;  %v2889_v25 = vld [vmem:[#allocation2 + $0x48] sm:$0xff]  ;;  %v2897_v30 = vld [vmem:[#allocation2 + $0x40] sm:$0xff] }
 0x211   : > { %2030 = vpow2.f32 %v650_v28  ;;  %v2835_v63 = vmax.f32 %v2811_v54, %v2789_v22  ;;  %v2839_v0 = vmax.f32 %v2813_v55, %v2789_v22  ;;  %v662_v1 = vmul.f32 1.442695, %v640_v52  ;;  %945 = vst.msk [vmem:[#allocation2 + $0x8] sm:$0xff] %vm927_vm2, %v2821_v59 }
 0x212   : > { %2032 = vpow2.f32 %v654_v29  ;;  %944 = vst.msk [vmem:[#allocation2] sm:$0xff] %vm927_vm2, %v2825_v60  ;;  %v664_v4 = vmul.f32 1.442695, %v641_v57  ;;  %947 = vst.msk [vmem:[#allocation2 + $0x18] sm:$0xff] %vm927_vm2, %v2831_v62  ;;  %v668_v8 = vmul.f32 1.442695, %v643_v58  ;;  %v644_v10 = vsub.f32 %v2761_v41, %v2789_v22 }
 0x213   : > { %2034 = vpow2.f32 %v656_v31  ;;  %946 = vst.msk [vmem:[#allocation2 + $0x10] sm:$0xff] %vm927_vm2, %v2835_v63  ;;  %949 = vst.msk [vmem:[#allocation2 + $0x28] sm:$0xff] %vm927_vm2, %v2839_v0  ;;  %v666_v9 = vmul.f32 1.442695, %v642_v61  ;;  %v645_v13 = vsub.f32 %v2755_v39, %v2789_v22  ;;  %v2871_v14 = vmax.f32 %v2857_v6, %v2789_v22  ;;  %v2899_v31 = vld [vmem:[#allocation2 + $0x58] sm:$0xff] }
 0x214   : > { %2036 = vpow2.f32 %v658_v51  ;;  %v2875_v15 = vmax.f32 %v2859_v7, %v2789_v22  ;;  %v646_v19 = vsub.f32 %v2773_v45, %v2789_v22  ;;  %v670_v23 = vmul.f32 1.442695, %v644_v10 }
 0x215   : > { %2038 = vpow2.f32 %v660_v56  ;;  %948 = vst.msk [vmem:[#allocation2 + $0x20] sm:$0xff] %vm927_vm2, %v2871_v14  ;;  %v672_v27 = vmul.f32 1.442695, %v645_v13  ;;  %v647_v28 = vsub.f32 %v2769_v44, %v2789_v22  ;;  %v2895_v29 = vmax.f32 %v2877_v17, %v2789_v22 }
 0x216   : > { %2040 = vpow2.f32 %v662_v1  ;;  %951 = vst.msk [vmem:[#allocation2 + $0x38] sm:$0xff] %vm927_vm2, %v2875_v15  ;;  %v674_v52 = vmul.f32 1.442695, %v646_v19  ;;  %v648_v56 = vsub.f32 %v2785_v49, %v2789_v22  ;;  %v2909_v58 = vmax.f32 %v2889_v25, %v2789_v22 }
 0x217   : > { %2042 = vpow2.f32 %v664_v4  ;;  %950 = vst.msk [vmem:[#allocation2 + $0x30] sm:$0xff] %vm927_vm2, %v2895_v29  ;;  %v2913_v1 = vmax.f32 %v2897_v30, %v2789_v22  ;;  %v2917_v4 = vmax.f32 %v2899_v31, %v2789_v22  ;;  %v649_v10 = vsub.f32 %v2781_v48, %v2789_v22 }
 0x218   : > { %2044 = vpow2.f32 %v666_v9  ;;  %v676_v9 = vmul.f32 1.442695, %v647_v28  ;;  %953 = vst.msk [vmem:[#allocation2 + $0x48] sm:$0xff] %vm927_vm2, %v2909_v58  ;;  %v678_v28 = vmul.f32 1.442695, %v648_v56 }
 0x219   : > { %2046 = vpow2.f32 %v668_v8  ;;  %952 = vst.msk [vmem:[#allocation2 + $0x40] sm:$0xff] %vm927_vm2, %v2913_v1  ;;  %955 = vst.msk [vmem:[#allocation2 + $0x58] sm:$0xff] %vm927_vm2, %v2917_v4  ;;  %v680_v19 = vmul.f32 1.442695, %v649_v10 }
 0x21a   : > { %2048 = vpow2.f32 %v670_v23  ;;  %v2933_v23 = vld [vmem:[#allocation2 + $0x50] sm:$0xff] }
 0x21b   : > { %2050 = vpow2.f32 %v672_v27 }
 0x21c   : > { %2052 = vpow2.f32 %v674_v52 }
 0x21d   : > { %v2029_v16 = vpop.eup %2028  ;;  %2054 = vpow2.f32 %v676_v9 }
 0x21e   : > { %v2031_v18 = vpop.eup %2030  ;;  %684 = vadd.xlane.f32.xlu1 %v2029_v16  ;;  %2056 = vpow2.f32 %v678_v28 }
 0x21f   : > { %682 = vadd.xlane.f32.xlu0 %v2031_v18  ;;  %v714_v21 = vadd.f32 %v2031_v18, %v2029_v16  ;;  %v2033_v26 = vpop.eup %2032  ;;  %2058 = vpow2.f32 %v680_v19 }
 0x220   : > { %v2035_v32 = vpop.eup %2034 }
 0x221   : > { %v715_v51 = vadd.f32 %v2033_v26, %v714_v21  ;;  %v2037_v8 = vpop.eup %2036  ;;  %v2943_v21 = vmax.f32 %v2933_v23, %v2789_v22 }
 0x222   : > { %688 = vadd.xlane.f32.xlu1 %v2035_v32  ;;  %v2039_v16 = vpop.eup %2038 }
 0x223   : > { %686 = vadd.xlane.f32.xlu0 %v2033_v26  ;;  %v716_v61 = vadd.f32 %v2035_v32, %v715_v51  ;;  %v2935_v26 = vld [vmem:[#allocation2 + $0x68] sm:$0xff]  ;;  %v2937_v32 = vld [vmem:[#allocation2 + $0x60] sm:$0xff]  ;;  %v2939_v51 = vld [vmem:[#allocation2 + $0x78] sm:$0xff]  ;;  %954 = vst.msk [vmem:[#allocation2 + $0x50] sm:$0xff] %vm927_vm2, %v2943_v21 }
 0x224   : > { %v2947_v24 = vmax.f32 %v2935_v26, %v2789_v22  ;;  %v2951_v52 = vmax.f32 %v2937_v32, %v2789_v22  ;;  %v2955_v56 = vmax.f32 %v2939_v51, %v2789_v22 }
 0x225   : > { %v717_v18 = vadd.f32 %v2037_v8, %v716_v61  ;;  %v2041_v61 = vpop.eup %2040 }
 0x226   : > { %692 = vadd.xlane.f32.xlu1 %v2039_v16  ;;  %v2043_v13 = vpop.eup %2042  ;;  %957 = vst.msk [vmem:[#allocation2 + $0x68] sm:$0xff] %vm927_vm2, %v2947_v24  ;;  %956 = vst.msk [vmem:[#allocation2 + $0x60] sm:$0xff] %vm927_vm2, %v2951_v52 }
 0x227   : > { %690 = vadd.xlane.f32.xlu0 %v2037_v8  ;;  %v718_v27 = vadd.f32 %v2039_v16, %v717_v18  ;;  %v2045_v10 = vpop.eup %2044  ;;  %959 = vst.msk [vmem:[#allocation2 + $0x78] sm:$0xff] %vm927_vm2, %v2955_v56 }
 0x229   : > { %v719_v57 = vadd.f32 %v2041_v61, %v718_v27  ;;  %v2971_v27 = vld [vmem:[#allocation2 + $0x70] sm:$0xff] }
 0x22a   : > { %696 = vadd.xlane.f32.xlu1 %v2043_v13  ;;  %v2977_v18 = vmax.f32 %v2971_v27, %v2789_v22 }
 0x22b   : > { %694 = vadd.xlane.f32.xlu0 %v2041_v61  ;;  %v720_v8 = vadd.f32 %v2043_v13, %v719_v57  ;;  %v2047_v57 = vpop.eup %2046 }
 0x22c   : > { %v2049_v19 = vpop.eup %2048  ;;  %958 = vst.msk [vmem:[#allocation2 + $0x70] sm:$0xff] %vm927_vm2, %v2977_v18 }
 0x22d   : > { %v721_v13 = vadd.f32 %v2045_v10, %v720_v8  ;;  %v2051_v16 = vpop.eup %2050 }
 0x22e   : > { %700 = vadd.xlane.f32.xlu1 %v2047_v57 }
 0x22f   : > { %698 = vadd.xlane.f32.xlu0 %v2045_v10  ;;  %v722_v28 = vadd.f32 %v2047_v57, %v721_v13  ;;  %v2053_v10 = vpop.eup %2052 }
 0x230   : > { %v2055_v57 = vpop.eup %2054 }
 0x231   : > { %v723_v9 = vadd.f32 %v2049_v19, %v722_v28  ;;  %v2057_v28 = vpop.eup %2056 }
 0x232   : > { %704 = vadd.xlane.f32.xlu1 %v2051_v16  ;;  %v2059_v12 = vpop.eup %2058 }
 0x233   : > { %702 = vadd.xlane.f32.xlu0 %v2049_v19  ;;  %v724_v20 = vadd.f32 %v2051_v16, %v723_v9 }
 0x235   : > { %v725_v13 = vadd.f32 %v2053_v10, %v724_v20 }
 0x236   : > { %708 = vadd.xlane.f32.xlu1 %v2055_v57 }
 0x237   : > { %706 = vadd.xlane.f32.xlu0 %v2053_v10  ;;  %v726_v61 = vadd.f32 %v2055_v57, %v725_v13  ;;  %v848_v10 = vsub.f32 %v2789_v22, %v2821_v59  ;;  %v3511_v57 = vsub.f32 %v2809_v53, %v2831_v62  ;;  %v3513_v53 = vsub.f32 %v2813_v55, %v2839_v0 }
 0x238   : > { %v3515_v55 = vsub.f32 %v2859_v7, %v2875_v15  ;;  %v3517_v7 = vsub.f32 %v2889_v25, %v2909_v58  ;;  %v857_v25 = vsub.f32 %v2789_v22, %v2943_v21 }
 0x239   : > { %v727_v11 = vadd.f32 %v2057_v28, %v726_v61  ;;  %v847_v61 = vsub.f32 %v2789_v22, %v2825_v60  ;;  %v805_v13 = vmul.f32 1.442695, %v3511_v57  ;;  %v858_v57 = vsub.f32 %v2789_v22, %v2917_v4 }
 0x23a   : > { %712 = vadd.xlane.f32.xlu1 %v2059_v12 }
 0x23b   : > { %710 = vadd.xlane.f32.xlu0 %v2057_v28  ;;  %v728_v19 = vadd.f32 %v2059_v12, %v727_v11  ;;  %v3509_v11 = vsub.f32 %v2803_v33, %v2821_v59  ;;  %v3512_v33 = vsub.f32 %v2811_v54, %v2835_v63  ;;  %v3514_v54 = vsub.f32 %v2857_v6, %v2871_v14 }
 0x23c   : > { %v3516_v6 = vsub.f32 %v2877_v17, %v2895_v29  ;;  %v3518_v17 = vsub.f32 %v2897_v30, %v2913_v1  ;;  %v3519_v30 = vsub.f32 %v2899_v31, %v2917_v4 }
 0x23d   : > { %v729_v9 = vrot.slane %v728_v19, 4  ;;  %v801_v12 = vmul.f32 1.442695, %v3509_v11  ;;  %v803_v59 = vmul.f32 1.442695, %v3512_v33  ;;  %v856_v11 = vsub.f32 %v2789_v22, %v2909_v58 }
 0x23f   : > { %v730_v16 = vadd.f32 %v729_v9, %v728_v19  ;;  %v851_v19 = vsub.f32 %v2789_v22, %v2871_v14  ;;  %v811_v14 = vmul.f32 1.442695, %v3516_v6 }
 0x241   : > { %v731_v5 = vrot.slane %v730_v16, 2 }
 0x243   : > { %v732_v8 = vadd.f32 %v731_v5, %v730_v16  ;;  %v865_v5 = vmul.f32 1.442695, %v848_v10  ;;  %v854_v16 = vsub.f32 %v2789_v22, %v2875_v15  ;;  %v853_v10 = vsub.f32 %v2789_v22, %v2895_v29 }
 0x244   : > { %v817_v15 = vmul.f32 1.442695, %v3517_v7  ;;  %v815_v29 = vmul.f32 1.442695, %v3518_v17  ;;  %v772_v17 = vld [vmem:[#allocation3 + $0x28] sm:$0xff] }
 0x245   : > { %v733_v3 = vrot.slane %v732_v8, 1 }
 0x247   : > { %v734_v2 = vadd.f32 %v733_v3, %v732_v8  ;;  %v3510_v3 = vsub.f32 %v2805_v50, %v2825_v60  ;;  %v849_v8 = vsub.f32 %v2789_v22, %v2835_v63  ;;  %v852_v60 = vsub.f32 %v2789_v22, %v2839_v0 }
 0x248   : > { %v807_v63 = vmul.f32 1.442695, %v3514_v54  ;;  %v813_v0 = vmul.f32 1.442695, %v3515_v55  ;;  %v770_v54 = vld [vmem:[#allocation3 + $0x18] sm:$0xff] }
 0x249   : > { %2060 = vlog2.f32 %v734_v2  ;;  %v799_v2 = vmul.f32 1.442695, %v3510_v3  ;;  %v867_v28 = vmul.f32 1.442695, %v849_v8  ;;  %v873_v9 = vmul.f32 1.442695, %v852_v60 }
 0x24a   : > { %2062 = vpow2.f32 %v801_v12  ;;  %v875_v12 = vmul.f32 1.442695, %v853_v10  ;;  %v855_v3 = vsub.f32 %v2789_v22, %v2913_v1  ;;  %v881_v8 = vmul.f32 1.442695, %v856_v11  ;;  %v769_v10 = vld [vmem:[#allocation3 + $0x10] sm:$0xff] }
 0x24b   : > { %2064 = vpow2.f32 %v799_v2  ;;  %v821_v1 = vmul.f32 1.442695, %v3519_v30  ;;  %v885_v55 = vmul.f32 1.442695, %v858_v57  ;;  %v771_v57 = vld [vmem:[#allocation3 + $0x20] sm:$0xff] }
 0x24c   : > { %2066 = vpow2.f32 %v865_v5  ;;  %v768_v5 = vld [vmem:[#allocation3 + $0x8] sm:$0xff] }
 0x256   : > { %v2061_v48 = vpop.eup %2060 }
 0x257   : > { %v961_v49 = vmul.f32 0.6931472, %v2061_v48  ;;  %v850_v48 = vsub.f32 %v2789_v22, %v2831_v62  ;;  %v809_v62 = vmul.f32 1.442695, %v3513_v53  ;;  %v2063_v2 = vpop.eup %2062 }
 0x259   : > { %v962_v20 = vadd.f32 %v961_v49, %v2789_v22  ;;  %v863_v49 = vmul.f32 1.442695, %v847_v61  ;;  %v869_v50 = vmul.f32 1.442695, %v850_v48  ;;  %v877_v61 = vmul.f32 1.442695, %v854_v16  ;;  %v2065_v48 = vpop.eup %2064 }
 0x25b   : > { %963 = vst [vmem:[%s3488_s27] sm:$0xff] %v962_v20  ;;  %2068 = vpow2.f32 %v863_v49  ;;  %v871_v20 = vmul.f32 1.442695, %v851_v19  ;;  %v767_v49 = vld [vmem:[#allocation3] sm:$0xff] }
 0x25c   : > { %2070 = vpow2.f32 %v805_v13  ;;  %v2067_v13 = vpop.eup %2066  ;;  %v831_v53 = vmul.f32 %v2065_v48, %v767_v49 }
 0x25d   : > { %2072 = vpow2.f32 %v803_v59  ;;  %v879_v59 = vmul.f32 1.442695, %v855_v3  ;;  %v3521_v3 = vsub.f32 %v2935_v26, %v2947_v24 }
 0x25e   : > { %2074 = vpow2.f32 %v869_v50  ;;  %v832_v50 = vmul.f32 %v2063_v2, %v768_v5 }
 0x25f   : > { %2076 = vpow2.f32 %v867_v28  ;;  %v825_v7 = vmul.f32 1.442695, %v3521_v3 }
 0x260   : > { %2078 = vpow2.f32 %v809_v62 }
 0x261   : > { %2080 = vpow2.f32 %v807_v63  ;;  %v3520_v63 = vsub.f32 %v2933_v23, %v2943_v21 }
 0x262   : > { %2082 = vpow2.f32 %v873_v9 }
 0x263   : > { %2084 = vpow2.f32 %v871_v20  ;;  %v819_v9 = vmul.f32 1.442695, %v3520_v63 }
 0x264   : > { %2086 = vpow2.f32 %v813_v0  ;;  %v860_v0 = vsub.f32 %v2789_v22, %v2947_v24  ;;  %v862_v24 = vsub.f32 %v2789_v22, %v2955_v56 }
 0x265   : > { %2088 = vpow2.f32 %v811_v14  ;;  %v883_v14 = vmul.f32 1.442695, %v857_v25 }
 0x266   : > { %2090 = vpow2.f32 %v877_v61  ;;  %v859_v61 = vsub.f32 %v2789_v22, %v2951_v52 }
 0x267   : > { %2092 = vpow2.f32 %v875_v12 }
 0x268   : > { %v2069_v58 = vpop.eup %2068  ;;  %2094 = vpow2.f32 %v817_v15  ;;  %v887_v25 = vmul.f32 1.442695, %v859_v61  ;;  %v776_v61 = vld [vmem:[#allocation3 + $0x48] sm:$0xff] }
 0x269   : > { %v2071_v19 = vpop.eup %2070  ;;  %2096 = vpow2.f32 %v815_v29  ;;  %v3522_v29 = vsub.f32 %v2937_v32, %v2951_v52 }
 0x26a   : > { %v2073_v16 = vpop.eup %2072  ;;  %2098 = vpow2.f32 %v881_v8  ;;  %v834_v21 = vmul.f32 %v2071_v19, %v770_v54 }
 0x26b   : > { %v2075_v6 = vpop.eup %2074  ;;  %2100 = vpow2.f32 %v879_v59  ;;  %v833_v2 = vmul.f32 %v2073_v16, %v769_v10  ;;  %v823_v48 = vmul.f32 1.442695, %v3522_v29  ;;  %v773_v16 = vld [vmem:[#allocation3 + $0x30] sm:$0xff] }
 0x26c   : > { %v2077_v11 = vpop.eup %2076  ;;  %2102 = vpow2.f32 %v821_v1 }
 0x26d   : > { %v2079_v15 = vpop.eup %2078  ;;  %2104 = vpow2.f32 %v819_v9 }
 0x26e   : > { %v2081_v49 = vpop.eup %2080  ;;  %2106 = vpow2.f32 %v885_v55  ;;  %v836_v32 = vmul.f32 %v2079_v15, %v772_v17 }
 0x26f   : > { %v2083_v26 = vpop.eup %2082  ;;  %2108 = vpow2.f32 %v883_v14  ;;  %v835_v19 = vmul.f32 %v2081_v49, %v771_v57 }
 0x270   : > { %2110 = vpow2.f32 %v825_v7 }
 0x271   : > { %2112 = vpow2.f32 %v823_v48 }
 0x2a7   : > { %v685_v33 = vpop.xlane.xlu1 %684 }
 0x2a8   : > { %v896_v60 = vmul.f32 %v2067_v13, %v685_v33  ;;  %v683_v28 = vpop.xlane.xlu0 %682  ;;  %v889_v13 = vmul.f32 1.442695, %v860_v0 }
 0x2a9   : > { %v895_v62 = vmul.f32 %v2069_v58, %v683_v28  ;;  %v861_v58 = vsub.f32 %v2789_v22, %v2977_v18  ;;  %v3523_v28 = vsub.f32 %v2939_v51, %v2955_v56  ;;  %v3524_v22 = vsub.f32 %v2971_v27, %v2977_v18 }
 0x2aa   : > { %v912_v20 = vadd.f32 %v896_v60, %v832_v50  ;;  %v2085_v50 = vpop.eup %2084  ;;  %2114 = vpow2.f32 %v889_v13 }
 0x2ab   : > { %v911_v31 = vadd.f32 %v895_v62, %v831_v53  ;;  %v689_v4 = vpop.xlane.xlu1 %688  ;;  %v829_v30 = vmul.f32 1.442695, %v3523_v28  ;;  %v2087_v1 = vpop.eup %2086  ;;  %v774_v62 = vld [vmem:[#allocation3 + $0x38] sm:$0xff]  ;;  %v827_v54 = vmul.f32 1.442695, %v3524_v22  ;;  %2116 = vpow2.f32 %v887_v25 }
 0x2ac   : > { %929 = vst.msk [vmem:[#allocation3 + $0x8] sm:$0xff] %vm927_vm2, %v912_v20  ;;  %v898_v23 = vmul.f32 %v2075_v6, %v689_v4  ;;  %v687_v12 = vpop.xlane.xlu0 %686  ;;  %v2089_v63 = vpop.eup %2088  ;;  %v893_v20 = vmul.f32 1.442695, %v862_v24  ;;  %v891_v56 = vmul.f32 1.442695, %v861_v58  ;;  %v838_v6 = vmul.f32 %v2087_v1, %v774_v62  ;;  %v777_v24 = vld [vmem:[#allocation3 + $0x50] sm:$0xff] }
 0x2ad   : > { %928 = vst.msk [vmem:[#allocation3] sm:$0xff] %vm927_vm2, %v911_v31  ;;  %v897_v5 = vmul.f32 %v2077_v11, %v687_v12  ;;  %v2091_v10 = vpop.eup %2090  ;;  %2118 = vpow2.f32 %v829_v30  ;;  %v837_v18 = vmul.f32 %v2089_v63, %v773_v16  ;;  %v780_v30 = vld [vmem:[#allocation3 + $0x68] sm:$0xff] }
 0x2ae   : > { %v914_v8 = vadd.f32 %v898_v23, %v834_v21  ;;  %v2093_v0 = vpop.eup %2092  ;;  %2120 = vpow2.f32 %v827_v54  ;;  %v775_v23 = vld [vmem:[#allocation3 + $0x40] sm:$0xff] }
 0x2af   : > { %v913_v33 = vadd.f32 %v897_v5, %v833_v2  ;;  %v693_v59 = vpop.xlane.xlu1 %692  ;;  %v2095_v14 = vpop.eup %2094  ;;  %2122 = vpow2.f32 %v893_v20 }
 0x2b0   : > { %931 = vst.msk [vmem:[#allocation3 + $0x18] sm:$0xff] %vm927_vm2, %v914_v8  ;;  %v900_v52 = vmul.f32 %v2083_v26, %v693_v59  ;;  %v691_v60 = vpop.xlane.xlu0 %690  ;;  %v2097_v11 = vpop.eup %2096  ;;  %2124 = vpow2.f32 %v891_v56  ;;  %v840_v2 = vmul.f32 %v2095_v14, %v776_v61  ;;  %v778_v8 = vld [vmem:[#allocation3 + $0x58] sm:$0xff] }
 0x2b1   : > { %930 = vst.msk [vmem:[#allocation3 + $0x10] sm:$0xff] %vm927_vm2, %v913_v33  ;;  %v899_v53 = vmul.f32 %v2085_v50, %v691_v60  ;;  %v2099_v12 = vpop.eup %2098  ;;  %v839_v48 = vmul.f32 %v2097_v11, %v775_v23  ;;  %v782_v56 = vld [vmem:[#allocation3 + $0x78] sm:$0xff] }
 0x2b2   : > { %v916_v9 = vadd.f32 %v900_v52, %v836_v32  ;;  %v2101_v15 = vpop.eup %2100 }
 0x2b3   : > { %v915_v55 = vadd.f32 %v899_v53, %v835_v19  ;;  %v697_v51 = vpop.xlane.xlu1 %696  ;;  %v2103_v29 = vpop.eup %2102  ;;  %v779_v53 = vld [vmem:[#allocation3 + $0x60] sm:$0xff] }
 0x2b4   : > { %933 = vst.msk [vmem:[#allocation3 + $0x28] sm:$0xff] %vm927_vm2, %v916_v9  ;;  %v902_v31 = vmul.f32 %v2091_v10, %v697_v51  ;;  %v695_v4 = vpop.xlane.xlu0 %694  ;;  %v2105_v57 = vpop.eup %2104  ;;  %v842_v58 = vmul.f32 %v2103_v29, %v778_v8 }
 0x2b5   : > { %932 = vst.msk [vmem:[#allocation3 + $0x20] sm:$0xff] %vm927_vm2, %v915_v55  ;;  %v901_v27 = vmul.f32 %v2093_v0, %v695_v4  ;;  %v2107_v26 = vpop.eup %2106  ;;  %v841_v60 = vmul.f32 %v2105_v57, %v777_v24 }
 0x2b6   : > { %v918_v21 = vadd.f32 %v902_v31, %v838_v6  ;;  %v2109_v25 = vpop.eup %2108  ;;  %v781_v31 = vld [vmem:[#allocation3 + $0x70] sm:$0xff] }
 0x2b7   : > { %v917_v3 = vadd.f32 %v901_v27, %v837_v18  ;;  %v701_v7 = vpop.xlane.xlu1 %700  ;;  %v2111_v52 = vpop.eup %2110 }
 0x2b8   : > { %935 = vst.msk [vmem:[#allocation3 + $0x38] sm:$0xff] %vm927_vm2, %v918_v21  ;;  %v904_v5 = vmul.f32 %v2099_v12, %v701_v7  ;;  %v699_v17 = vpop.xlane.xlu0 %698  ;;  %v2113_v1 = vpop.eup %2112  ;;  %v844_v9 = vmul.f32 %v2111_v52, %v780_v30 }
 0x2b9   : > { %934 = vst.msk [vmem:[#allocation3 + $0x30] sm:$0xff] %vm927_vm2, %v917_v3  ;;  %v903_v49 = vmul.f32 %v2101_v15, %v699_v17  ;;  %v2115_v62 = vpop.eup %2114  ;;  %v843_v55 = vmul.f32 %v2113_v1, %v779_v53 }
 0x2ba   : > { %v920_v13 = vadd.f32 %v904_v5, %v840_v2  ;;  %v2117_v63 = vpop.eup %2116 }
 0x2bb   : > { %v919_v33 = vadd.f32 %v903_v49, %v839_v48  ;;  %v705_v59 = vpop.xlane.xlu1 %704  ;;  %v2119_v10 = vpop.eup %2118 }
 0x2bc   : > { %937 = vst.msk [vmem:[#allocation3 + $0x48] sm:$0xff] %vm927_vm2, %v920_v13  ;;  %v906_v50 = vmul.f32 %v2107_v26, %v705_v59  ;;  %v703_v32 = vpop.xlane.xlu0 %702  ;;  %v2121_v0 = vpop.eup %2120  ;;  %v846_v61 = vmul.f32 %v2119_v10, %v782_v56 }
 0x2bd   : > { %936 = vst.msk [vmem:[#allocation3 + $0x40] sm:$0xff] %vm927_vm2, %v919_v33  ;;  %v905_v28 = vmul.f32 %v2109_v25, %v703_v32  ;;  %v2123_v4 = vpop.eup %2122  ;;  %v845_v23 = vmul.f32 %v2121_v0, %v781_v31 }
 0x2be   : > { %v922_v19 = vadd.f32 %v906_v50, %v842_v58  ;;  %v2125_v27 = vpop.eup %2124 }
 0x2bf   : > { %v921_v22 = vadd.f32 %v905_v28, %v841_v60  ;;  %v709_v54 = vpop.xlane.xlu1 %708 }
 0x2c0   : > { %939 = vst.msk [vmem:[#allocation3 + $0x58] sm:$0xff] %vm927_vm2, %v922_v19  ;;  %v908_v16 = vmul.f32 %v2115_v62, %v709_v54  ;;  %v707_v20 = vpop.xlane.xlu0 %706 }
 0x2c1   : > { %938 = vst.msk [vmem:[#allocation3 + $0x50] sm:$0xff] %vm927_vm2, %v921_v22  ;;  %v907_v51 = vmul.f32 %v2117_v63, %v707_v20 }
 0x2c2   : > { %v924_v6 = vadd.f32 %v908_v16, %v844_v9 }
 0x2c3   : > { %v923_v14 = vadd.f32 %v907_v51, %v843_v55  ;;  %v713_v18 = vpop.xlane.xlu1 %712 }
 0x2c4   : > { %941 = vst.msk [vmem:[#allocation3 + $0x68] sm:$0xff] %vm927_vm2, %v924_v6  ;;  %v910_v11 = vmul.f32 %v2123_v4, %v713_v18  ;;  %v711_v21 = vpop.xlane.xlu0 %710 }
 0x2c5   : > { %940 = vst.msk [vmem:[#allocation3 + $0x60] sm:$0xff] %vm927_vm2, %v923_v14  ;;  %v909_v12 = vmul.f32 %v2125_v27, %v711_v21  ;;  %967 = sbr.rel (%p1767_p8) target bundleno = 889 (0x379), region = 36 }
 0x2c6   : > { %v926_v3 = vadd.f32 %v910_v11, %v846_v61 }
 0x2c7   : > { %v925_v7 = vadd.f32 %v909_v12, %v845_v23 }
 0x2c8   : > { %943 = vst.msk [vmem:[#allocation3 + $0x78] sm:$0xff] %vm927_vm2, %v926_v3 }
 0x2c9   : > { %942 = vst.msk [vmem:[#allocation3 + $0x70] sm:$0xff] %vm927_vm2, %v925_v7 }
 0x2ca   : > { %v968_v15 = vlaneseq }
 0x2cc   : > { %v969_v2 = vshrl.u32 %v968_v15, 7  ;;  %v986_v5 = vand.u32 127, %v968_v15 }
 0x2ce   : > { %vm987_vm3 = vcmp.eq.s32.totalorder %v969_v2, %v986_v5  ;;  %v971_v17 = vadd.s32 16, %v969_v2  ;;  %v972_v29 = vadd.s32 24, %v969_v2  ;;  %v970_v48 = vadd.s32 8, %v969_v2 }
 0x2cf   : > { %v1003_v49 = vsel %vm987_vm3, %v2747_v36, 0.0  ;;  %v973_v8 = vadd.s32 32, %v969_v2  ;;  %v974_v57 = vadd.s32 40, %v969_v2  ;;  %v975_v26 = vadd.s32 48, %v969_v2 }
 0x2d0   : > { %1019 = vadd.xlane.f32.xlu0 %v1003_v49  ;;  %vm989_vm4 = vcmp.eq.s32.totalorder %v971_v17, %v986_v5  ;;  %vm990_vm5 = vcmp.eq.s32.totalorder %v972_v29, %v986_v5  ;;  %vm988_vm6 = vcmp.eq.s32.totalorder %v970_v48, %v986_v5  ;;  %v976_v59 = vadd.s32 56, %v969_v2 }
 0x2d1   : > { %v1005_v13 = vsel %vm989_vm4, %v2759_v40, 0.0  ;;  %v1004_v24 = vsel %vm988_vm6, %v2741_v34, 0.0  ;;  %vm991_vm7 = vcmp.eq.s32.totalorder %v973_v8, %v986_v5  ;;  %v1006_v33 = vsel %vm990_vm5, %v2749_v37, 0.0 }
 0x2d2   : > { %1023 = vadd.xlane.f32.xlu1 %v1005_v13  ;;  %vm992_vm8 = vcmp.eq.s32.totalorder %v974_v57, %v986_v5  ;;  %v1007_v36 = vsel %vm991_vm7, %v2767_v43, 0.0  ;;  %vm993_vm9 = vcmp.eq.s32.totalorder %v975_v26, %v986_v5  ;;  %v977_v25 = vadd.s32 64, %v969_v2 }
 0x2d3   : > { %v1008_v58 = vsel %vm992_vm8, %v2763_v42, 0.0  ;;  %vm994_vm10 = vcmp.eq.s32.totalorder %v976_v59, %v986_v5  ;;  %v978_v40 = vadd.s32 72, %v969_v2  ;;  %v1009_v34 = vsel %vm993_vm9, %v2779_v47, 0.0 }
 0x2d4   : > { %1021 = vadd.xlane.f32.xlu0 %v1004_v24  ;;  %vm995_vm11 = vcmp.eq.s32.totalorder %v977_v25, %v986_v5  ;;  %v979_v50 = vadd.s32 80, %v969_v2  ;;  %v1010_v37 = vsel %vm994_vm10, %v2775_v46, 0.0  ;;  %v980_v32 = vadd.s32 88, %v969_v2 }
 0x2d5   : > { %vm996_vm12 = vcmp.eq.s32.totalorder %v978_v40, %v986_v5  ;;  %v1011_v43 = vsel %vm995_vm11, %v2753_v38, 0.0  ;;  %v981_v52 = vadd.s32 96, %v969_v2  ;;  %v982_v60 = vadd.s32 104, %v969_v2 }
 0x2d6   : > { %1025 = vadd.xlane.f32.xlu1 %v1006_v33  ;;  %vm997_vm13 = vcmp.eq.s32.totalorder %v979_v50, %v986_v5  ;;  %v1012_v42 = vsel %vm996_vm12, %v2743_v35, 0.0  ;;  %vm998_vm14 = vcmp.eq.s32.totalorder %v980_v32, %v986_v5  ;;  %v983_v28 = vadd.s32 112, %v969_v2  ;;  %v3525_v35 = vld [vmem:[#allocation21_spill] sm:$0xff] }
 0x2d7   : > { %v1013_v47 = vsel %vm997_vm13, %v2761_v41, 0.0  ;;  %vm999_vm15 = vcmp.eq.s32.totalorder %v981_v52, %v986_v5  ;;  %v1014_v46 = vsel %vm998_vm14, %v2755_v39, 0.0  ;;  %vm1000_vm0 = vcmp.eq.s32.totalorder %v982_v60, %v986_v5  ;;  %v3526_v41 = vld [vmem:[#allocation20_spill] sm:$0xff] }
 0x2d8   : > { %1027 = vadd.xlane.f32.xlu0 %v1007_v36  ;;  %v984_v30 = vadd.s32 120, %v969_v2  ;;  %v1015_v38 = vsel %vm999_vm15, %v2773_v45, 0.0  ;;  %vm1001_vm1 = vcmp.eq.s32.totalorder %v983_v28, %v986_v5  ;;  %v1016_v1 = vsel %vm1000_vm0, %v2769_v44, 0.0 }
 0x2d9   : > { %v1017_v19 = vsel %vm1001_vm1, %v3525_v35, 0.0 }
 0x2da   : > { %1029 = vadd.xlane.f32.xlu1 %v1008_v58  ;;  %vm1002_vm3 = vcmp.eq.s32.totalorder %v984_v30, %v986_v5 }
 0x2db   : > { %v1018_v53 = vsel %vm1002_vm3, %v3526_v41, 0.0 }
 0x2dc   : > { %1031 = vadd.xlane.f32.xlu0 %v1009_v34 }
 0x2de   : > { %1033 = vadd.xlane.f32.xlu1 %v1010_v37 }
 0x2e0   : > { %1035 = vadd.xlane.f32.xlu0 %v1011_v43 }
 0x2e2   : > { %1037 = vadd.xlane.f32.xlu1 %v1012_v42 }
 0x2e4   : > { %1039 = vadd.xlane.f32.xlu0 %v1013_v47 }
 0x2e6   : > { %1041 = vadd.xlane.f32.xlu1 %v1014_v46 }
 0x2e8   : > { %1043 = vadd.xlane.f32.xlu0 %v1015_v38 }
 0x2ea   : > { %1045 = vadd.xlane.f32.xlu1 %v1016_v1 }
 0x2ec   : > { %1047 = vadd.xlane.f32.xlu0 %v1017_v19 }
 0x2ee   : > { %1049 = vadd.xlane.f32.xlu1 %v1018_v53 }
 0x359   : > { %v1020_v62 = vpop.xlane.xlu0 %1019 }
 0x35a   : > { %1051 = vst.msk [vmem:[#allocation4] sm:$0xff] %vm927_vm2, %v1020_v62 }
 0x35b   : > { %v1024_v39 = vpop.xlane.xlu1 %1023 }
 0x35c   : > { %1053 = vst.msk [vmem:[#allocation4 + $0x10] sm:$0xff] %vm927_vm2, %v1024_v39 }
 0x35d   : > { %v1022_v45 = vpop.xlane.xlu0 %1021 }
 0x35e   : > { %1052 = vst.msk [vmem:[#allocation4 + $0x8] sm:$0xff] %vm927_vm2, %v1022_v45 }
 0x35f   : > { %v1026_v22 = vpop.xlane.xlu1 %1025 }
 0x360   : > { %1054 = vst.msk [vmem:[#allocation4 + $0x18] sm:$0xff] %vm927_vm2, %v1026_v22 }
 0x361   : > { %v1028_v44 = vpop.xlane.xlu0 %1027 }
 0x362   : > { %1055 = vst.msk [vmem:[#allocation4 + $0x20] sm:$0xff] %vm927_vm2, %v1028_v44 }
 0x363   : > { %v1030_v54 = vpop.xlane.xlu1 %1029 }
 0x364   : > { %1056 = vst.msk [vmem:[#allocation4 + $0x28] sm:$0xff] %vm927_vm2, %v1030_v54 }
 0x365   : > { %v1032_v63 = vpop.xlane.xlu0 %1031 }
 0x366   : > { %1057 = vst.msk [vmem:[#allocation4 + $0x30] sm:$0xff] %vm927_vm2, %v1032_v63 }
 0x367   : > { %v1034_v9 = vpop.xlane.xlu1 %1033 }
 0x368   : > { %1058 = vst.msk [vmem:[#allocation4 + $0x38] sm:$0xff] %vm927_vm2, %v1034_v9 }
 0x369   : > { %v1036_v16 = vpop.xlane.xlu0 %1035 }
 0x36a   : > { %1059 = vst.msk [vmem:[#allocation4 + $0x40] sm:$0xff] %vm927_vm2, %v1036_v16 }
 0x36b   : > { %v1038_v20 = vpop.xlane.xlu1 %1037 }
 0x36c   : > { %1060 = vst.msk [vmem:[#allocation4 + $0x48] sm:$0xff] %vm927_vm2, %v1038_v20 }
 0x36d   : > { %v1040_v10 = vpop.xlane.xlu0 %1039 }
 0x36e   : > { %1061 = vst.msk [vmem:[#allocation4 + $0x50] sm:$0xff] %vm927_vm2, %v1040_v10 }
 0x36f   : > { %v1042_v55 = vpop.xlane.xlu1 %1041 }
 0x370   : > { %1062 = vst.msk [vmem:[#allocation4 + $0x58] sm:$0xff] %vm927_vm2, %v1042_v55 }
 0x371   : > { %v1044_v51 = vpop.xlane.xlu0 %1043 }
 0x372   : > { %1063 = vst.msk [vmem:[#allocation4 + $0x60] sm:$0xff] %vm927_vm2, %v1044_v51 }
 0x373   : > { %v1046_v56 = vpop.xlane.xlu1 %1045 }
 0x374   : > { %1064 = vst.msk [vmem:[#allocation4 + $0x68] sm:$0xff] %vm927_vm2, %v1046_v56 }
 0x375   : > { %v1048_v0 = vpop.xlane.xlu0 %1047 }
 0x376   : > { %1065 = vst.msk [vmem:[#allocation4 + $0x70] sm:$0xff] %vm927_vm2, %v1048_v0 }
 0x377   : > { %v1050_v6 = vpop.xlane.xlu1 %1049 }
 0x378   : > { %1066 = vst.msk [vmem:[#allocation4 + $0x78] sm:$0xff] %vm927_vm2, %v1050_v6 }
 0x379 PF: > { %p1768_p9 = scmp.ne.s32.totalorder %s2384_s21, 2 }
 0x37b   : > { %1070 = sbr.rel (%p1768_p9) target bundleno = 1121 (0x461), region = 40 }
 0x380   : > { %v1104_v31 = vld [vmem:[#allocation4 + $0x8] sm:$0xff]  ;;  %v1103_v14 = vld [vmem:[#allocation4] sm:$0xff]  ;;  %v2404_v18 = vmov 0   ;;  %v1106_v23 = vld [vmem:[#allocation4 + $0x18] sm:$0xff] }
 0x381   : > { %v3117_v4 = vld [vmem:[#allocation2 + $0x8] sm:$0xff]  ;;  %2127 = vset.pattern.permute.xlu1 %v2404_v18  ;;  %2126 = vset.pattern.permute.xlu0 %v2404_v18  ;;  %v3119_v27 = vadd.f32 -0.4, %v1104_v31  ;;  %v3122_v11 = vld [vmem:[#allocation2] sm:$0xff]  ;;  %v3124_v21 = vadd.f32 -0.4, %v1103_v14 }
 0x382   : > { %v1200_v61 = vsub.f32 %v1104_v31, %v3117_v4  ;;  %1430 = vperm.xlu1 %2127, %v1104_v31   ;;  %1425 = vperm.xlu0 %2126, %v1103_v14   ;;  %v1199_v12 = vsub.f32 %v1103_v14, %v3122_v11  ;;  %v3127_v3 = vadd.f32 -0.4, %v1106_v23  ;;  %v3129_v7 = vld [vmem:[#allocation2 + $0x18] sm:$0xff]  ;;  %v1105_v15 = vld [vmem:[#allocation4 + $0x10] sm:$0xff]  ;;  %v1108_v49 = vld [vmem:[#allocation4 + $0x28] sm:$0xff] }
 0x383   : > { %v1136_v2 = vsub.f32 %v3119_v27, %v3117_v4  ;;  %v1135_v17 = vsub.f32 %v3124_v21, %v3122_v11  ;;  %v1202_v29 = vsub.f32 %v1106_v23, %v3129_v7  ;;  %v3136_v48 = vld [vmem:[#allocation2 + $0x10] sm:$0xff]  ;;  %v3140_v13 = vadd.f32 -0.4, %v1105_v15  ;;  %v1107_v26 = vld [vmem:[#allocation4 + $0x20] sm:$0xff]  ;;  %v1110_v33 = vld [vmem:[#allocation4 + $0x38] sm:$0xff] }
 0x384   : > { %v1217_v5 = vmul.f32 1.442695, %v1200_v61  ;;  %v1215_v8 = vmul.f32 1.442695, %v1199_v12  ;;  %v1138_v57 = vsub.f32 %v3127_v3, %v3129_v7  ;;  %v1201_v24 = vsub.f32 %v1105_v15, %v3136_v48  ;;  %v3145_v50 = vld [vmem:[#allocation2 + $0x28] sm:$0xff]  ;;  %v3147_v37 = vld [vmem:[#allocation2 + $0x20] sm:$0xff] }
 0x385   : > { %v1153_v59 = vmul.f32 1.442695, %v1136_v2  ;;  %v1151_v36 = vmul.f32 1.442695, %v1135_v17  ;;  %v1221_v25 = vmul.f32 1.442695, %v1202_v29  ;;  %v1137_v40 = vsub.f32 %v3140_v13, %v3136_v48 }
 0x386   : > { %2128 = vpow2.f32 %v1217_v5  ;;  %1440 = vperm.xlu1 %2127, %v1106_v23   ;;  %v1157_v58 = vmul.f32 1.442695, %v1138_v57  ;;  %1435 = vperm.xlu0 %2126, %v1105_v15   ;;  %v1219_v34 = vmul.f32 1.442695, %v1201_v24  ;;  %v3149_v32 = vadd.f32 -0.4, %v1108_v49 }
 0x387   : > { %2130 = vpow2.f32 %v1215_v8  ;;  %v1204_v43 = vsub.f32 %v1108_v49, %v3145_v50  ;;  %v3152_v52 = vadd.f32 -0.4, %v1107_v26  ;;  %v3154_v42 = vld [vmem:[#allocation2 + $0x38] sm:$0xff]  ;;  %v1155_v60 = vmul.f32 1.442695, %v1137_v40  ;;  %v1109_v46 = vld [vmem:[#allocation4 + $0x30] sm:$0xff] }
 0x388   : > { %2132 = vpow2.f32 %v1153_v59  ;;  %v1203_v47 = vsub.f32 %v1107_v26, %v3147_v37  ;;  %v3157_v28 = vadd.f32 -0.4, %v1110_v33  ;;  %v1140_v30 = vsub.f32 %v3149_v32, %v3145_v50  ;;  %v3166_v41 = vld [vmem:[#allocation2 + $0x30] sm:$0xff]  ;;  %v3171_v44 = vld [vmem:[#allocation2 + $0x48] sm:$0xff]  ;;  %v3180_v20 = vld [vmem:[#allocation2 + $0x40] sm:$0xff] }
 0x389   : > { %2134 = vpow2.f32 %v1151_v36  ;;  %v1139_v38 = vsub.f32 %v3152_v52, %v3147_v37  ;;  %v1225_v1 = vmul.f32 1.442695, %v1204_v43  ;;  %v1206_v19 = vsub.f32 %v1110_v33, %v3154_v42  ;;  %v3173_v54 = vld [vmem:[#allocation4 + $0x48] sm:$0xff]  ;;  %v3182_v10 = vld [vmem:[#allocation4 + $0x40] sm:$0xff]  ;;  %v3191_v14 = vld [vmem:[#allocation4 + $0x58] sm:$0xff] }
 0x38a   : > { %2136 = vpow2.f32 %v1157_v58  ;;  %1450 = vperm.xlu1 %2127, %v1108_v49   ;;  %1445 = vperm.xlu0 %2126, %v1107_v26   ;;  %v1142_v35 = vsub.f32 %v3157_v28, %v3154_v42  ;;  %v1161_v53 = vmul.f32 1.442695, %v1140_v30  ;;  %v3168_v39 = vadd.f32 -0.4, %v1109_v46  ;;  %v3200_v12 = vld [vmem:[#allocation4 + $0x50] sm:$0xff]  ;;  %v3202_v2 = vld [vmem:[#allocation2 + $0x58] sm:$0xff] }
 0x38b   : > { %2138 = vpow2.f32 %v1221_v25  ;;  %v1159_v62 = vmul.f32 1.442695, %v1139_v38  ;;  %v1223_v45 = vmul.f32 1.442695, %v1203_v47  ;;  %v1205_v22 = vsub.f32 %v1109_v46, %v3166_v41  ;;  %v1088_v17 = vld [vmem:[#allocation3 + $0x8] sm:$0xff]  ;;  %v1087_v8 = vld [vmem:[#allocation3] sm:$0xff] }
 0x38c   : > { %2140 = vpow2.f32 %v1155_v60  ;;  %v1165_v63 = vmul.f32 1.442695, %v1142_v35  ;;  %v1141_v9 = vsub.f32 %v3168_v39, %v3166_v41  ;;  %v3178_v16 = vadd.f32 -0.4, %v3173_v54  ;;  %v3209_v25 = vld [vmem:[#allocation2 + $0x50] sm:$0xff] }
 0x38d   : > { %2142 = vpow2.f32 %v1219_v34  ;;  %v1229_v55 = vmul.f32 1.442695, %v1206_v19  ;;  %v1208_v51 = vsub.f32 %v3173_v54, %v3171_v44  ;;  %v3187_v56 = vadd.f32 -0.4, %v3182_v10  ;;  %v3211_v34 = vld [vmem:[#allocation4 + $0x68] sm:$0xff]  ;;  %v1089_v60 = vld [vmem:[#allocation3 + $0x10] sm:$0xff] }
 0x38e   : > { %2144 = vpow2.f32 %v1161_v53  ;;  %1460 = vperm.xlu1 %2127, %v1110_v33   ;;  %1455 = vperm.xlu0 %2126, %v1109_v46   ;;  %v1163_v0 = vmul.f32 1.442695, %v1141_v9  ;;  %v1227_v6 = vmul.f32 1.442695, %v1205_v22  ;;  %v1144_v31 = vsub.f32 %v3178_v16, %v3171_v44  ;;  %v1090_v33 = vld [vmem:[#allocation3 + $0x18] sm:$0xff] }
 0x38f   : > { %2146 = vpow2.f32 %v1225_v1  ;;  %v1143_v18 = vsub.f32 %v3187_v56, %v3180_v20  ;;  %v1207_v61 = vsub.f32 %v3182_v10, %v3180_v20  ;;  %v3198_v23 = vadd.f32 -0.4, %v3191_v14 }
 0x390   : > { %2148 = vpow2.f32 %v1159_v62  ;;  %v1169_v15 = vmul.f32 1.442695, %v1144_v31  ;;  %v1233_v29 = vmul.f32 1.442695, %v1208_v51  ;;  %v3205_v24 = vadd.f32 -0.4, %v3200_v12 }
 0x391   : > { %2150 = vpow2.f32 %v1223_v45  ;;  %v1167_v57 = vmul.f32 1.442695, %v1143_v18  ;;  %v1231_v59 = vmul.f32 1.442695, %v1207_v61  ;;  %v1146_v36 = vsub.f32 %v3198_v23, %v3202_v2  ;;  %v1092_v62 = vld [vmem:[#allocation3 + $0x28] sm:$0xff]  ;;  %v1091_v31 = vld [vmem:[#allocation3 + $0x20] sm:$0xff] }
 0x392   : > { %2152 = vpow2.f32 %v1165_v63  ;;  %v1210_v46 = vsub.f32 %v3191_v14, %v3202_v2  ;;  %v1145_v35 = vsub.f32 %v3205_v24, %v3209_v25  ;;  %v3218_v22 = vadd.f32 -0.4, %v3211_v34  ;;  %v3220_v51 = vld [vmem:[#allocation2 + $0x68] sm:$0xff] }
 0x393   : > { %v2129_v5 = vpop.eup %2128  ;;  %2154 = vpow2.f32 %v1229_v55  ;;  %v1173_v45 = vmul.f32 1.442695, %v1146_v36  ;;  %v1209_v61 = vsub.f32 %v3200_v12, %v3209_v25 }
 0x394   : > { %v2131_v49 = vpop.eup %2130  ;;  %2156 = vpow2.f32 %v1163_v0  ;;  %v3222_v0 = vld [vmem:[#allocation4 + $0x60] sm:$0xff]  ;;  %v1237_v18 = vmul.f32 1.442695, %v1210_v46  ;;  %v1212_v46 = vsub.f32 %v3211_v34, %v3220_v51 }
 0x395   : > { %v2133_v26 = vpop.eup %2132  ;;  %2158 = vpow2.f32 %v1227_v6 }
 0x396   : > { %v2135_v58 = vpop.eup %2134  ;;  %v1184_v40 = vadd.f32 %v2133_v26, %v1088_v17  ;;  %2160 = vpow2.f32 %v1169_v15  ;;  %v3229_v26 = vadd.f32 -0.4, %v3222_v0 }
 0x397   : > { %v2137_v43 = vpop.eup %2136  ;;  %v1183_v47 = vadd.f32 %v2135_v58, %v1087_v8  ;;  %2162 = vpow2.f32 %v1233_v29  ;;  %v1171_v8 = vmul.f32 1.442695, %v1145_v35 }
 0x398   : > { %v2139_v30 = vpop.eup %2138  ;;  %v1186_v38 = vadd.f32 %v2137_v43, %v1090_v33  ;;  %v1248_v1 = vsub.f32 %v1184_v40, %v2129_v5  ;;  %2164 = vpow2.f32 %v1167_v57  ;;  %v1148_v57 = vsub.f32 %v3218_v22, %v3220_v51  ;;  %v3231_v33 = vld [vmem:[#allocation4 + $0x78] sm:$0xff]  ;;  %v3233_v40 = vld [vmem:[#allocation2 + $0x60] sm:$0xff] }
 0x399   : > { %v2141_v19 = vpop.eup %2140  ;;  %v1247_v53 = vsub.f32 %v1183_v47, %v2131_v49  ;;  %2166 = vpow2.f32 %v1231_v59  ;;  %v1094_v49 = vld [vmem:[#allocation3 + $0x38] sm:$0xff]  ;;  %v1235_v47 = vmul.f32 1.442695, %v1209_v61 }
 0x39a   : > { %v2143_v63 = vpop.eup %2142  ;;  %v1185_v9 = vadd.f32 %v2141_v19, %v1089_v60  ;;  %v1250_v55 = vsub.f32 %v1186_v38, %v2139_v30  ;;  %2168 = vlog2.f32 %v1248_v1  ;;  %v1093_v60 = vld [vmem:[#allocation3 + $0x30] sm:$0xff]  ;;  %v3240_v19 = vadd.f32 -0.4, %v3231_v33 }
 0x39b   : > { %v2145_v6 = vpop.eup %2144  ;;  %2170 = vlog2.f32 %v1247_v53  ;;  %v3237_v30 = vld [vmem:[#allocation4 + $0x70] sm:$0xff] }
 0x39c   : > { %v2147_v15 = vpop.eup %2146  ;;  %v1249_v5 = vsub.f32 %v1185_v9, %v2143_v63  ;;  %2172 = vlog2.f32 %v1250_v55  ;;  %v1188_v17 = vadd.f32 %v2145_v6, %v1092_v62  ;;  %3527 = vst [vmem:[#allocation22_spill] sm:$0xff] %v3237_v30  ;;  %v1096_v62 = vld [vmem:[#allocation3 + $0x48] sm:$0xff]  ;;  %v1147_v63 = vsub.f32 %v3229_v26, %v3233_v40  ;;  %v3244_v9 = vld [vmem:[#allocation2 + $0x78] sm:$0xff] }
 0x39d   : > { %v2149_v29 = vpop.eup %2148  ;;  %2174 = vpow2.f32 %v1173_v45  ;;  %v1177_v45 = vmul.f32 1.442695, %v1148_v57 }
 0x39e   : > { %v2151_v59 = vpop.eup %2150  ;;  %2176 = vlog2.f32 %v1249_v5  ;;  %v1252_v36 = vsub.f32 %v1188_v17, %v2147_v15  ;;  %v1187_v58 = vadd.f32 %v2149_v29, %v1091_v31  ;;  %v1095_v15 = vld [vmem:[#allocation3 + $0x40] sm:$0xff]  ;;  %v1241_v5 = vmul.f32 1.442695, %v1212_v46  ;;  %v3251_v29 = vld [vmem:[#allocation2 + $0x70] sm:$0xff] }
 0x39f   : > { %v2153_v43 = vpop.eup %2152  ;;  %2178 = vpow2.f32 %v1237_v18  ;;  %v3247_v18 = vadd.f32 -0.4, %v3237_v30  ;;  %v1211_v17 = vsub.f32 %v3222_v0, %v3233_v40 }
 0x3a0   : > { %v2155_v38 = vpop.eup %2154  ;;  %2180 = vlog2.f32 %v1252_v36  ;;  %v1251_v1 = vsub.f32 %v1187_v58, %v2151_v59  ;;  %v1190_v35 = vadd.f32 %v2153_v43, %v1094_v49  ;;  %v1150_v59 = vsub.f32 %v3240_v19, %v3244_v9 }
 0x3a1   : > { %v2157_v53 = vpop.eup %2156  ;;  %2182 = vpow2.f32 %v1171_v8  ;;  %v1175_v58 = vmul.f32 1.442695, %v1147_v63  ;;  %v1214_v43 = vsub.f32 %v3231_v33, %v3244_v9  ;;  %v1098_v63 = vld [vmem:[#allocation3 + $0x58] sm:$0xff] }
 0x3a2   : > { %v2159_v55 = vpop.eup %2158  ;;  %2184 = vlog2.f32 %v1251_v1  ;;  %v1254_v6 = vsub.f32 %v1190_v35, %v2155_v38  ;;  %v1189_v31 = vadd.f32 %v2157_v53, %v1093_v60  ;;  %v1149_v38 = vsub.f32 %v3247_v18, %v3251_v29 }
 0x3a3   : > { %v2161_v61 = vpop.eup %2160  ;;  %2186 = vpow2.f32 %v1235_v47  ;;  %v1239_v35 = vmul.f32 1.442695, %v1211_v17  ;;  %v1213_v53 = vsub.f32 %v3237_v30, %v3251_v29 }
 0x3a4   : > { %v2163_v49 = vpop.eup %2162  ;;  %2188 = vlog2.f32 %v1254_v6  ;;  %v1253_v8 = vsub.f32 %v1189_v31, %v2159_v55  ;;  %v1192_v57 = vadd.f32 %v2161_v61, %v1096_v62  ;;  %v1181_v6 = vmul.f32 1.442695, %v1150_v59 }
 0x3a5   : > { %v2165_v36 = vpop.eup %2164  ;;  %2190 = vpow2.f32 %v1177_v45  ;;  %v1243_v59 = vmul.f32 1.442695, %v1213_v53 }
 0x3a6   : > { %v2167_v60 = vpop.eup %2166  ;;  %2192 = vlog2.f32 %v1253_v8  ;;  %v1256_v47 = vsub.f32 %v1192_v57, %v2163_v49  ;;  %v1191_v46 = vadd.f32 %v2165_v36, %v1095_v15  ;;  %v1245_v49 = vmul.f32 1.442695, %v1214_v43 }
 0x3a7   : > { %v2169_v1 = vpop.eup %2168  ;;  %2194 = vpow2.f32 %v1241_v5  ;;  %v1179_v57 = vmul.f32 1.442695, %v1149_v38 }
 0x3a8   : > { %v2171_v62 = vpop.eup %2170  ;;  %v1266_v55 = vmul.f32 0.6931472, %v2169_v1  ;;  %2196 = vlog2.f32 %v1256_v47  ;;  %v1255_v45 = vsub.f32 %v1191_v46, %v2167_v60  ;;  %v1097_v60 = vld [vmem:[#allocation3 + $0x50] sm:$0xff] }
 0x3a9   : > { %v2173_v31 = vpop.eup %2172  ;;  %v1264_v61 = vmul.f32 0.6931472, %v2171_v62  ;;  %2198 = vpow2.f32 %v1175_v58 }
 0x3aa   : > { %v2175_v15 = vpop.eup %2174  ;;  %v1270_v8 = vmul.f32 0.6931472, %v2173_v31  ;;  %2200 = vlog2.f32 %v1255_v45  ;;  %v1296_v17 = vadd.f32 %v1266_v55, %v3117_v4 }
 0x3ab   : > { %v2177_v36 = vpop.eup %2176  ;;  %v1295_v5 = vadd.f32 %v1264_v61, %v3122_v11  ;;  %v1194_v30 = vadd.f32 %v2175_v15, %v1098_v63  ;;  %2202 = vpow2.f32 %v1239_v35 }
 0x3ac   : > { %v2179_v1 = vpop.eup %2178  ;;  %v1268_v47 = vmul.f32 0.6931472, %v2177_v36  ;;  %2204 = vpow2.f32 %v1181_v6  ;;  %v1298_v45 = vadd.f32 %v1270_v8, %v3129_v7  ;;  %v1312_v35 = vsub.f32 %v3119_v27, %v1296_v17 }
 0x3ad   : > { %v2181_v46 = vpop.eup %2180  ;;  %v1311_v58 = vsub.f32 %v3124_v21, %v1295_v5  ;;  %v1258_v43 = vsub.f32 %v1194_v30, %v2179_v1  ;;  %2206 = vpow2.f32 %v1245_v49  ;;  %v1100_v21 = vld [vmem:[#allocation3 + $0x68] sm:$0xff]  ;;  %v1099_v5 = vld [vmem:[#allocation3 + $0x60] sm:$0xff] }
 0x3ae   : > { %v2183_v62 = vpop.eup %2182  ;;  %v1297_v38 = vadd.f32 %v1268_v47, %v3136_v48  ;;  %v1274_v11 = vmul.f32 0.6931472, %v2181_v46  ;;  %2208 = vpow2.f32 %v1179_v57  ;;  %v1314_v7 = vsub.f32 %v3127_v3, %v1298_v45 }
 0x3af   : > { %v2185_v4 = vpop.eup %2184  ;;  %1329 = vperm.xlu0 %2126, %v1311_v58   ;;  %2210 = vlog2.f32 %v1258_v43  ;;  %v1193_v55 = vadd.f32 %v2183_v62, %v1097_v60  ;;  %v1102_v58 = vld [vmem:[#allocation3 + $0x78] sm:$0xff] }
 0x3b0   : > { %v2187_v63 = vpop.eup %2186  ;;  %v1313_v53 = vsub.f32 %v3140_v13, %v1297_v38  ;;  %v1272_v6 = vmul.f32 0.6931472, %v2185_v4  ;;  %2212 = vpow2.f32 %v1243_v59  ;;  %v1300_v48 = vadd.f32 %v1274_v11, %v3145_v50  ;;  %v1101_v11 = vld [vmem:[#allocation3 + $0x70] sm:$0xff] }
 0x3b1   : > { %v2189_v30 = vpop.eup %2188  ;;  %v1257_v31 = vsub.f32 %v1193_v55, %v2187_v63 }
 0x3b2   : > { %v2191_v61 = vpop.eup %2190  ;;  %1339 = vperm.xlu1 %2127, %v1313_v53   ;;  %v1299_v49 = vadd.f32 %v1272_v6, %v3147_v37  ;;  %v1278_v15 = vmul.f32 0.6931472, %v2189_v30  ;;  %v1316_v3 = vsub.f32 %v3149_v32, %v1300_v48 }
 0x3b3   : > { %v2193_v27 = vpop.eup %2192  ;;  %1334 = vperm.xlu0 %2126, %v1312_v35   ;;  %2214 = vlog2.f32 %v1257_v31  ;;  %v1196_v8 = vadd.f32 %v2191_v61, %v1100_v21 }
 0x3b4   : > { %v2195_v57 = vpop.eup %2194  ;;  %v1315_v13 = vsub.f32 %v3152_v52, %v1299_v49  ;;  %v1276_v36 = vmul.f32 0.6931472, %v2193_v27  ;;  %v1302_v50 = vadd.f32 %v1278_v15, %v3154_v42 }
 0x3b5   : > { %v2197_v17 = vpop.eup %2196  ;;  %v1260_v1 = vsub.f32 %v1196_v8, %v2195_v57 }
 0x3b6   : > { %v2199_v47 = vpop.eup %2198  ;;  %1344 = vperm.xlu1 %2127, %v1314_v7   ;;  %v1301_v37 = vadd.f32 %v1276_v36, %v3166_v41  ;;  %v1282_v60 = vmul.f32 0.6931472, %v2197_v17  ;;  %v1318_v32 = vsub.f32 %v3157_v28, %v1302_v50 }
 0x3b7   : > { %v2201_v59 = vpop.eup %2200  ;;  %1349 = vperm.xlu0 %2126, %v1315_v13   ;;  %2216 = vlog2.f32 %v1260_v1  ;;  %v1195_v46 = vadd.f32 %v2199_v47, %v1099_v5 }
 0x3b8   : > { %v2203_v43 = vpop.eup %2202  ;;  %v1317_v52 = vsub.f32 %v3168_v39, %v1301_v37  ;;  %v1280_v62 = vmul.f32 0.6931472, %v2201_v59  ;;  %v1304_v42 = vadd.f32 %v1282_v60, %v3171_v44 }
 0x3b9   : > { %v2205_v38 = vpop.eup %2204  ;;  %v1259_v45 = vsub.f32 %v1195_v46, %v2203_v43 }
 0x3ba   : > { %v2207_v4 = vpop.eup %2206  ;;  %1354 = vperm.xlu1 %2127, %v1316_v3   ;;  %v1303_v41 = vadd.f32 %v1280_v62, %v3180_v20  ;;  %v1198_v35 = vadd.f32 %v2205_v38, %v1102_v58  ;;  %v1320_v31 = vsub.f32 %v3178_v16, %v1304_v42 }
 0x3bb   : > { %v2209_v55 = vpop.eup %2208  ;;  %1359 = vperm.xlu0 %2126, %v1317_v52   ;;  %2218 = vlog2.f32 %v1259_v45 }
 0x3bc   : > { %v2211_v63 = vpop.eup %2210  ;;  %v1319_v53 = vsub.f32 %v3187_v56, %v1303_v41  ;;  %v1262_v39 = vsub.f32 %v1198_v35, %v2207_v4  ;;  %v1197_v6 = vadd.f32 %v2209_v55, %v1101_v11 }
 0x3bd   : > { %v2213_v21 = vpop.eup %2212  ;;  %v1286_v30 = vmul.f32 0.6931472, %v2211_v63 }
 0x3be   : > { %1364 = vperm.xlu1 %2127, %v1318_v32   ;;  %2220 = vlog2.f32 %v1262_v39  ;;  %v1261_v28 = vsub.f32 %v1197_v6, %v2213_v21 }
 0x3bf   : > { %1369 = vperm.xlu0 %2126, %v1319_v53   ;;  %v1306_v44 = vadd.f32 %v1286_v30, %v3202_v2 }
 0x3c0   : > { %v2215_v20 = vpop.eup %2214  ;;  %2222 = vlog2.f32 %v1261_v28 }
 0x3c1   : > { %v1284_v61 = vmul.f32 0.6931472, %v2215_v20  ;;  %v1322_v7 = vsub.f32 %v3198_v23, %v1306_v44 }
 0x3c2   : > { %1374 = vperm.xlu1 %2127, %v1320_v31  }
 0x3c3   : > { %v1305_v56 = vadd.f32 %v1284_v61, %v3209_v25 }
 0x3c4   : > { %v2217_v48 = vpop.eup %2216 }
 0x3c5   : > { %v1321_v49 = vsub.f32 %v3205_v24, %v1305_v56  ;;  %v1290_v15 = vmul.f32 0.6931472, %v2217_v48 }
 0x3c6   : > { %1384 = vperm.xlu1 %2127, %v1322_v7  }
 0x3c7   : > { %1379 = vperm.xlu0 %2126, %v1321_v49   ;;  %v1308_v16 = vadd.f32 %v1290_v15, %v3220_v51 }
 0x3c8   : > { %v2219_v27 = vpop.eup %2218 }
 0x3c9   : > { %v1324_v8 = vsub.f32 %v3218_v22, %v1308_v16  ;;  %v1288_v2 = vmul.f32 0.6931472, %v2219_v27 }
 0x3cb   : > { %v2221_v57 = vpop.eup %2220  ;;  %1394 = vperm.xlu1 %2127, %v1324_v8   ;;  %v1307_v13 = vadd.f32 %v1288_v2, %v3233_v40 }
 0x3cc   : > { %v1294_v36 = vmul.f32 0.6931472, %v2221_v57 }
 0x3cd   : > { %v2223_v23 = vpop.eup %2222  ;;  %v1323_v25 = vsub.f32 %v3229_v26, %v1307_v13  ;;  %v3528_v26 = vld [vmem:[#allocation22_spill] sm:$0xff] }
 0x3ce   : > { %v1310_v5 = vadd.f32 %v1294_v36, %v3244_v9  ;;  %v1292_v24 = vmul.f32 0.6931472, %v2223_v23 }
 0x3cf   : > { %1389 = vperm.xlu0 %2126, %v1323_v25  }
 0x3d0   : > { %v1326_v17 = vsub.f32 %v3240_v19, %v1310_v5  ;;  %v1309_v51 = vadd.f32 %v1292_v24, %v3251_v29 }
 0x3d2   : > { %1404 = vperm.xlu1 %2127, %v1326_v17   ;;  %v1325_v22 = vsub.f32 %v3247_v18, %v1309_v51 }
 0x3d4   : > { %1399 = vperm.xlu0 %2126, %v1325_v22  }
 0x3d6   : > { %1470 = vperm.xlu1 %2127, %v3173_v54  }
 0x3d8   : > { %1465 = vperm.xlu0 %2126, %v3182_v10  }
 0x3da   : > { %1480 = vperm.xlu1 %2127, %v3191_v14  }
 0x3dc   : > { %1475 = vperm.xlu0 %2126, %v3200_v12  }
 0x3de   : > { %1490 = vperm.xlu1 %2127, %v3211_v34  }
 0x3e0   : > { %1485 = vperm.xlu0 %2126, %v3222_v0  }
 0x3e2   : > { %1500 = vperm.xlu1 %2127, %v3231_v33  }
 0x3e4   : > { %1495 = vperm.xlu0 %2126, %v3528_v26  }
 0x3fd   : > { %v1431_v40 = vpop.permute.xlu1 %1430  ;;  %v1426_v54 = vpop.permute.xlu0 %1425 }
 0x3fe   : > { %1504 = vst [vmem:[%s2577_s20 + $0x8] sm:$0xff] %v1431_v40  ;;  %1503 = vst [vmem:[%s2577_s20] sm:$0xff] %v1426_v54 }
 0x401   : > { %v1441_v10 = vpop.permute.xlu1 %1440  ;;  %v1436_v14 = vpop.permute.xlu0 %1435 }
 0x402   : > { %1506 = vst [vmem:[%s2577_s20 + $0x18] sm:$0xff] %v1441_v10  ;;  %1505 = vst [vmem:[%s2577_s20 + $0x10] sm:$0xff] %v1436_v14 }
 0x405   : > { %v1451_v12 = vpop.permute.xlu1 %1450  ;;  %v1446_v34 = vpop.permute.xlu0 %1445 }
 0x406   : > { %1508 = vst [vmem:[%s2577_s20 + $0x28] sm:$0xff] %v1451_v12  ;;  %1507 = vst [vmem:[%s2577_s20 + $0x20] sm:$0xff] %v1446_v34 }
 0x409   : > { %v1461_v0 = vpop.permute.xlu1 %1460  ;;  %v1456_v33 = vpop.permute.xlu0 %1455 }
 0x40a   : > { %1510 = vst [vmem:[%s2577_s20 + $0x38] sm:$0xff] %v1461_v0  ;;  %1509 = vst [vmem:[%s2577_s20 + $0x30] sm:$0xff] %v1456_v33 }
 0x42a   : > { %v1330_v19 = vpop.permute.xlu0 %1329 }
 0x42b   : > { %1407 = vst [vmem:[%s2575_s5] sm:$0xff] %v1330_v19 }
 0x42d   : > { %v1340_v9 = vpop.permute.xlu1 %1339 }
 0x42e   : > { %1409 = vst [vmem:[%s2575_s5 + $0x10] sm:$0xff] %v1340_v9  ;;  %v1335_v18 = vpop.permute.xlu0 %1334 }
 0x42f   : > { %1408 = vst [vmem:[%s2575_s5 + $0x8] sm:$0xff] %v1335_v18 }
 0x431   : > { %v1345_v29 = vpop.permute.xlu1 %1344 }
 0x432   : > { %1410 = vst [vmem:[%s2575_s5 + $0x18] sm:$0xff] %v1345_v29  ;;  %v1350_v1 = vpop.permute.xlu0 %1349 }
 0x433   : > { %1411 = vst [vmem:[%s2575_s5 + $0x20] sm:$0xff] %v1350_v1 }
 0x435   : > { %v1355_v47 = vpop.permute.xlu1 %1354 }
 0x436   : > { %1412 = vst [vmem:[%s2575_s5 + $0x28] sm:$0xff] %v1355_v47  ;;  %v1360_v3 = vpop.permute.xlu0 %1359 }
 0x437   : > { %1413 = vst [vmem:[%s2575_s5 + $0x30] sm:$0xff] %v1360_v3 }
 0x439   : > { %v1365_v50 = vpop.permute.xlu1 %1364 }
 0x43a   : > { %1414 = vst [vmem:[%s2575_s5 + $0x38] sm:$0xff] %v1365_v50  ;;  %v1370_v37 = vpop.permute.xlu0 %1369 }
 0x43b   : > { %1415 = vst [vmem:[%s2575_s5 + $0x40] sm:$0xff] %v1370_v37 }
 0x43d   : > { %v1375_v60 = vpop.permute.xlu1 %1374 }
 0x43e   : > { %1416 = vst [vmem:[%s2575_s5 + $0x48] sm:$0xff] %v1375_v60 }
 0x441   : > { %v1385_v59 = vpop.permute.xlu1 %1384 }
 0x442   : > { %1418 = vst [vmem:[%s2575_s5 + $0x58] sm:$0xff] %v1385_v59  ;;  %v1380_v46 = vpop.permute.xlu0 %1379 }
 0x443   : > { %1417 = vst [vmem:[%s2575_s5 + $0x50] sm:$0xff] %v1380_v46 }
 0x446   : > { %v1395_v58 = vpop.permute.xlu1 %1394 }
 0x447   : > { %1420 = vst [vmem:[%s2575_s5 + $0x68] sm:$0xff] %v1395_v58 }
 0x44a   : > { %v1390_v43 = vpop.permute.xlu0 %1389 }
 0x44b   : > { %1419 = vst [vmem:[%s2575_s5 + $0x60] sm:$0xff] %v1390_v43 }
 0x44d   : > { %v1405_v52 = vpop.permute.xlu1 %1404 }
 0x44e   : > { %1422 = vst [vmem:[%s2575_s5 + $0x78] sm:$0xff] %v1405_v52 }
 0x44f   : > { %v1400_v62 = vpop.permute.xlu0 %1399 }
 0x450   : > { %1421 = vst [vmem:[%s2575_s5 + $0x70] sm:$0xff] %v1400_v62 }
 0x451   : > { %v1471_v38 = vpop.permute.xlu1 %1470 }
 0x452   : > { %1512 = vst [vmem:[%s2577_s20 + $0x48] sm:$0xff] %v1471_v38 }
 0x453   : > { %v1466_v45 = vpop.permute.xlu0 %1465 }
 0x454   : > { %1511 = vst [vmem:[%s2577_s20 + $0x40] sm:$0xff] %v1466_v45 }
 0x455   : > { %v1481_v11 = vpop.permute.xlu1 %1480 }
 0x456   : > { %1514 = vst [vmem:[%s2577_s20 + $0x58] sm:$0xff] %v1481_v11 }
 0x457   : > { %v1476_v4 = vpop.permute.xlu0 %1475 }
 0x458   : > { %1513 = vst [vmem:[%s2577_s20 + $0x50] sm:$0xff] %v1476_v4 }
 0x459   : > { %v1491_v32 = vpop.permute.xlu1 %1490 }
 0x45a   : > { %1516 = vst [vmem:[%s2577_s20 + $0x68] sm:$0xff] %v1491_v32 }
 0x45b   : > { %v1486_v42 = vpop.permute.xlu0 %1485 }
 0x45c   : > { %1515 = vst [vmem:[%s2577_s20 + $0x60] sm:$0xff] %v1486_v42 }
 0x45d   : > { %v1501_v41 = vpop.permute.xlu1 %1500 }
 0x45e   : > { %1518 = vst [vmem:[%s2577_s20 + $0x78] sm:$0xff] %v1501_v41 }
 0x45f   : > { %v1496_v35 = vpop.permute.xlu0 %1495 }
 0x460   : > { %1517 = vst [vmem:[%s2577_s20 + $0x70] sm:$0xff] %v1496_v35 }
 0x461 PF: > { %s3529_s23 = sadd.s32 4294967295, %s2400_s25   ;;  %s1795_s28 = sshll.u32 %s2388_s22, 11 }
 0x462   : > { %s3335_s24 = sand.u32 1, %s3529_s23   ;;  %s3530_s3 = sld [smem:[#allocation25_spill]] }
 0x463   : > { %s1559_s30 = sshll.u32 %s2577_s20, 4  ;;  %s3349_s11 = scalar_lea.hbm %s3474_s2, %s1795_s28  ;;  %s3344_s30 = int_to_ptr.vmem [resolvable:$true] %s1559_s30 }
 0x464   : > { %s2224_s23 = scalar_lea.vmem %s3344_s30, 2048  ;;  %s2405_s29 = smov [#allocation7]  }
 0x465   : > { %p2225_p10 = scmp.ne.s32.totalorder %s3344_s30, %s2224_s23  ;;  %s2228_s14 = sshll.u32 %s2405_s29, 4  ;;  %s2229_s14 = int_to_ptr.vmem [resolvable:$false] %s2228_s14 }
 0x466   : > { %s2230_s20 = scalar_lea.vmem %s2229_s14, 4096  ;;  %p2231_p1 = scmp.lt.s32.totalorder %s3344_s30, %s2229_s14 }
 0x467   : > { %p2226_p11 = pnand %p2225_p10, %p2508_p3  ;;  %p2232_p4 = scmp.lt.s32.totalorder %s2230_s20, %s2224_s23 }
 0x468   : > { %s3341_s15 = scalar_lea.hbm %s3530_s3, %s1795_s28 }
 0x469   : > { %p2227_p0 = pneg %p2226_p11  ;;  %p2233_p2 = por %p2232_p4, %p2231_p1 }
 0x46b   : > { %p2234_p5 = pnand %p2233_p2, %p2227_p0 }
 0x46d   : > { %2237 = shalt.err (!%p2234_p5)
}
 0x46e   : > { %s2238_s28 = scalar_lea.hbm %s3341_s15, 2048  ;;  %s2242_s29 = scalar_lea.hbm %s3530_s3, 6144 }
 0x46f   : > { %p2239_p6 = scmp.ne.s32.totalorder %s3341_s15, %s2238_s28  ;;  %p2243_p10 = scmp.lt.s32.totalorder %s3341_s15, %s3530_s3 }
 0x470   : > { %p2244_p11 = scmp.lt.s32.totalorder %s2242_s29, %s2238_s28 }
 0x471   : > { %p2240_p8 = pnand %p2239_p6, %p2508_p3 }
 0x472   : > { %p2245_p0 = por %p2244_p11, %p2243_p10 }
 0x473   : > { %p2241_p9 = pneg %p2240_p8 }
 0x475   : > { %p2246_p1 = pnand %p2245_p0, %p2241_p9 }
 0x477   : > { %2249 = shalt.err (!%p2246_p1)
}
 0x478   : > { %s2406_s23 = smov 128   ;;  %s2407_s14 = smov 8  }
 0x479   : > { %s3531_s27 = scalar_lea.sflag [#allocation8], %s3335_s24  ;;  %s1543_s12 = sshll.u32 %s2575_s5, 4  ;;  %s3379_s12 = int_to_ptr.vmem [resolvable:$true] %s1543_s12 }
 0x47a   : > { %1919 = dma.vmem_to_hbm [thread:$0]  (%p2508_p3), %s3344_s30, 2048, %s3341_s15, %s3531_s27, %s2406_s23, %s2406_s23, %s2407_s14  }
 0x47b   : > { %s1917_s20 = smul.u32 3, %s2388_s22  ;;  %s3532_s28 = scalar_lea.vmem [#allocation9], %s2561_s8 }
 0x47c   : > { %s3383_s7 = sshll.u32 %s3532_s28, 4  ;;  %s3533_s9 = sand.u32 1, %s2376_s19   ;;  %s1578_s7 = int_to_ptr.vmem [resolvable:$true] %s3383_s7 }
 0x47d   : > { %s1520_s29 = scalar_lea.sflag [#allocation6], %s3533_s9  ;;  %s2250_s0 = scalar_lea.vmem %s3379_s12, 2048 }
 0x47e   : > { %p2251_p4 = scmp.ne.s32.totalorder %s3379_s12, %s2250_s0  ;;  %s2408_s1 = smov [#allocation5]  }
 0x47f   : > { %s2254_s3 = sshll.u32 %s2408_s1, 4  ;;  %s2255_s3 = int_to_ptr.vmem [resolvable:$false] %s2254_s3 }
 0x480   : > { %p2252_p2 = pnand %p2251_p4, %p2508_p3  ;;  %s2256_s5 = scalar_lea.vmem %s2255_s3, 4096 }
 0x481   : > { %p2257_p6 = scmp.lt.s32.totalorder %s3379_s12, %s2255_s3  ;;  %p2258_p8 = scmp.lt.s32.totalorder %s2256_s5, %s2250_s0 }
 0x482   : > { %p2253_p5 = pneg %p2252_p2 }
 0x483   : > { %p2259_p9 = por %p2258_p8, %p2257_p6 }
 0x485   : > { %p2260_p10 = pnand %p2259_p9, %p2253_p5 }
 0x487   : > { %2263 = shalt.err (!%p2260_p10)
}
 0x488   : > { %s2264_s8 = scalar_lea.hbm %s3349_s11, 2048  ;;  %s2268_s1 = scalar_lea.hbm %s3474_s2, 6144 }
 0x489   : > { %p2265_p11 = scmp.ne.s32.totalorder %s3349_s11, %s2264_s8  ;;  %p2269_p4 = scmp.lt.s32.totalorder %s3349_s11, %s3474_s2 }
 0x48a   : > { %p2270_p2 = scmp.lt.s32.totalorder %s2268_s1, %s2264_s8 }
 0x48b   : > { %p2266_p0 = pnand %p2265_p11, %p2508_p3 }
 0x48c   : > { %p2271_p5 = por %p2270_p2, %p2269_p4 }
 0x48d   : > { %p2267_p1 = pneg %p2266_p0 }
 0x48f   : > { %p2272_p6 = pnand %p2271_p5, %p2267_p1 }
 0x491   : > { %2275 = shalt.err (!%p2272_p6)
}
 0x492   : > { %1918 = dma.vmem_to_hbm [thread:$0]  (%p2508_p3), %s3379_s12, 2048, %s3349_s11, %s1520_s29, %s2406_s23, %s2406_s23, %s2407_s14  }
 0x493   : > { %s1573_s0 = sadd.s32 %s2384_s21, %s1917_s20  ;;  %s2276_s15 = scalar_lea.vmem %s1578_s7, 128 }
 0x494   : > { %s1792_s3 = sshll.u32 %s1573_s0, 7  ;;  %p2277_p8 = scmp.ne.s32.totalorder %s1578_s7, %s2276_s15 }
 0x495   : > { %s1575_s8 = scalar_lea.hbm %s3476_s4, %s1792_s3  ;;  %s2409_s6 = smov [#allocation9]  }
 0x496   : > { %p2278_p9 = pnand %p2277_p8, %p2539_p12  ;;  %s2280_s30 = sshll.u32 %s2409_s6, 4  ;;  %s2281_s30 = int_to_ptr.vmem [resolvable:$false] %s2280_s30 }
 0x497   : > { %s2282_s1 = scalar_lea.vmem %s2281_s30, 256  ;;  %p2283_p11 = scmp.lt.s32.totalorder %s1578_s7, %s2281_s30 }
 0x498   : > { %p2279_p10 = pneg %p2278_p9  ;;  %p2284_p0 = scmp.lt.s32.totalorder %s2282_s1, %s2276_s15 }
 0x49a   : > { %p2285_p3 = por %p2284_p0, %p2283_p11 }
 0x49c   : > { %p2286_p1 = pnand %p2285_p3, %p2279_p10 }
 0x49e   : > { %2289 = shalt.err (!%p2286_p1)
}
 0x49f   : > { %s2290_s21 = scalar_lea.hbm %s1575_s8, 128  ;;  %s2294_s23 = scalar_lea.hbm %s3476_s4, 1152 }
 0x4a0   : > { %p2291_p4 = scmp.ne.s32.totalorder %s1575_s8, %s2290_s21  ;;  %p2295_p6 = scmp.lt.s32.totalorder %s1575_s8, %s3476_s4 }
 0x4a1   : > { %p2296_p8 = scmp.lt.s32.totalorder %s2294_s23, %s2290_s21 }
 0x4a2   : > { %p2292_p2 = pnand %p2291_p4, %p2539_p12 }
 0x4a3   : > { %p2297_p9 = por %p2296_p8, %p2295_p6 }
 0x4a4   : > { %p2293_p5 = pneg %p2292_p2 }
 0x4a6   : > { %p2298_p13 = pnand %p2297_p9, %p2293_p5 }
 0x4a8   : > { %2301 = shalt.err (!%p2298_p13)
}
 0x4a9   : > { %s3534_s20 = scalar_lea.sflag [#allocation8], %s3335_s24 }
 0x4aa   : > { %1920 = dma.vmem_to_hbm [thread:$0]  (%p2539_p12), %s1578_s7, 128, %s1575_s8, %s3534_s20  }
 0x4ab PF: > { %p1934_p10 = scmp.ge.s32.totalorder %s2400_s25, 2  ;;  %s1589_s29 = sand.u32 1, %s2372_s18  }
 0x4ac   : > { %s1590_s27 = scalar_lea.sflag [#allocation6], %s1589_s29 }
 0x4ad   : > { %p1925_p11 = pnand %p1934_p10, %p2527_p7 }
 0x4af   : > { %p1926_p0 = pneg %p1925_p11 }
 0x4b1   : > { %2347 = dma.done.wait (%p1926_p0), %s1590_s27, 2048  }
 0x4b2   : > { %2349 = vsyncadd (%p1926_p0), %s1590_s27, 4294965248  ;;  %s3535_s28 = sadd.s32 4294967294, %s2400_s25  }
 0x4b3   : > { %s1598_s0 = sand.u32 1, %s3535_s28  }
 0x4b4   : > { %s1599_s3 = scalar_lea.sflag [#allocation8], %s1598_s0 }
 0x4b5   : > { %2351 = dma.done.wait (%p1926_p0), %s1599_s3, 2048  }
 0x4b6   : > { %2353 = vsyncadd (%p1926_p0), %s1599_s3, 4294965248  ;;  %p3536_p12 = scmp.ne.s32.totalorder %s3504_s26, 0 }
 0x4b8   : > { %p1931_p13 = pnand %p1934_p10, %p3536_p12 }
 0x4ba   : > { %p1932_p3 = pneg %p1931_p13 }
 0x4bc   : > { %2355 = dma.done.wait (%p1932_p3), %s1599_s3, 128  }
 0x4bd   : > { %2357 = vsyncadd (%p1932_p3), %s1599_s3, 4294967168  ;;  %s21_s25 = sadd.s32 1, %s2400_s25   ;;  %s3537_s18 = sld [smem:[#allocation19_spill]] }
 0x4be   : > { %p18_p1 = scmp.ge.s32.totalorder %s21_s25, 11   ;;  %s3538_s10 = sld [smem:[#allocation13_spill]] }
 0x4bf   : > { %s3539_s20 = sld [smem:[#allocation18_spill]]  ;;  %s3544_s15 = smov %s2364_s16 }
 0x4c0   : > { %s3540_s21 = sld [smem:[#allocation14_spill]]  ;;  %s3545_s16 = smov %s2368_s17 }
 0x4c1   : > { %s3541_s22 = sld [smem:[#allocation15_spill]]  ;;  %20 = sbr.rel (!%p18_p1) target bundleno = 13 (0xd), region = 110 }
 0x4c2   : > { %s3542_s23 = sld [smem:[#allocation16_spill]] }
 0x4c3   : > { %s3543_s24 = sld [smem:[#allocation17_spill]]  ;;  %s3546_s17 = smov %s3537_s18 }
 0x4c4   : > { %s3547_s18 = smov %s2376_s19  ;;  %s3548_s19 = smov %s3538_s10 }
 0x4c6   :  { %1613 = vsyncpa [#allocation6], 1 }
 0x4c7   :  { %1615 = vsyncpa [#allocation6 + $0x1], 1 }
 0x4c8   :  { %1616 = vsyncpa [#allocation8], 1 }
 0x4c9   :  { %1618 = vsyncpa [#allocation8 + $0x1], 1 }

</bundles_post_ra>
